<compile_context>
chip_gen: v6e
topology: v6e:2x2x1
jax: 0.10.0
libtpu: 0.0.40
codegen_flags: <defaults>
</compile_context>

<pallas_src>
import jax
import jax.numpy as jnp
from jax.experimental import pallas as pl
from jax.experimental.pallas import tpu as pltpu


LANE = 128      # lane width (last dim) and node-count padding (contraction dims)


def _ceil_to(x, m):
    return ((x + m - 1) // m) * m


def _pad2d(a, rows, cols):
    out = jnp.zeros((rows, cols), a.dtype)
    return out.at[: a.shape[0], : a.shape[1]].set(a)


# --------------------------------------------------------------------------
# Fused forward kernel: encoder layer 1 + (layer 2 folded with decoder)
# --------------------------------------------------------------------------
def fused_hetero_sage_kernel(adj_dc_ref, adj_cd_ref, invdeg_d_ref, invdeg_c_ref,
                             x_cell_ref, x_drug_ref,
                             wl1_cd_ref, wr1_cd_ref, b1_cd_ref,
                             wl1_dc_ref, wr1_dc_ref, b1_dc_ref,
                             wl2cd_ref, wr2cd_ref, b2cd_ref,
                             wl2dc_ref, wr2dc_ref, b2dc_ref,
                             s_cell_ref, s_drug_ref):
    bf16 = jnp.bfloat16
    f32 = jnp.float32

    adj_dc = adj_dc_ref[...]        # (Nd, Nc) bf16, raw edge multiplicities
    adj_cd = adj_cd_ref[...]        # (Nc, Nd) bf16
    inv_d = invdeg_d_ref[...]       # (Nd, 1)  f32, 1/deg(drug)
    inv_c = invdeg_c_ref[...]       # (Nc, 1)  f32, 1/deg(cell)
    x_cell = x_cell_ref[...]        # (Nc, Fc) bf16
    x_drug = x_drug_ref[...]        # (Nd, Fd) bf16

    # ---------------- encoder layer 1 (two matmuls summed, relu) ----------------
    # edge type (cellline -> drug): dst = drug
    agg_c = (jnp.dot(adj_dc, x_cell, preferred_element_type=f32) * inv_d).astype(bf16)
    h_drug = jnp.maximum(
        jnp.dot(agg_c, wl1_cd_ref[...], preferred_element_type=f32)
        + jnp.dot(x_drug, wr1_cd_ref[...], preferred_element_type=f32)
        + b1_cd_ref[...], 0.0).astype(bf16)                                  # (Nd, H)

    # edge type (drug -> cellline): dst = cellline
    agg_d = (jnp.dot(adj_cd, x_drug, preferred_element_type=f32) * inv_c).astype(bf16)
    h_cell = jnp.maximum(
        jnp.dot(agg_d, wl1_dc_ref[...], preferred_element_type=f32)
        + jnp.dot(x_cell, wr1_dc_ref[...], preferred_element_type=f32)
        + b1_dc_ref[...], 0.0).astype(bf16)                                  # (Nc, H)

    # ---------------- layer 2 folded with decoder (per-node scalar scores) -------
    # s_drug = z_drug @ dec_wd ; weights pre-multiplied on host, lane-padded.
    agg2_c = (jnp.dot(adj_dc, h_cell, preferred_element_type=f32) * inv_d).astype(bf16)
    s_drug_ref[...] = (jnp.dot(agg2_c, wl2cd_ref[...], preferred_element_type=f32)
                       + jnp.dot(h_drug, wr2cd_ref[...], preferred_element_type=f32)
                       + b2cd_ref[...])                                      # (Nd, 128)

    agg2_d = (jnp.dot(adj_cd, h_drug, preferred_element_type=f32) * inv_c).astype(bf16)
    s_cell_ref[...] = (jnp.dot(agg2_d, wl2dc_ref[...], preferred_element_type=f32)
                       + jnp.dot(h_cell, wr2dc_ref[...], preferred_element_type=f32)
                       + b2dc_ref[...])                                      # (Nc, 128)


def fused_forward(adj_dc, adj_cd, inv_deg_d, inv_deg_c, x_cell, x_drug, p):
    nc = x_cell.shape[0]
    nd = x_drug.shape[0]
    inputs = (adj_dc, adj_cd, inv_deg_d, inv_deg_c, x_cell, x_drug,
              p['wl1_cd'], p['wr1_cd'], p['b1_cd'],
              p['wl1_dc'], p['wr1_dc'], p['b1_dc'],
              p['wl2cd_f'], p['wr2cd_f'], p['b2cd_f'],
              p['wl2dc_f'], p['wr2dc_f'], p['b2dc_f'])

    out_shape = (jax.ShapeDtypeStruct((nc, LANE), jnp.float32),
                 jax.ShapeDtypeStruct((nd, LANE), jnp.float32))

    # VMEM budget: all operands + outputs resident (no grid at toy scale), plus
    # headroom for intermediates; capped at v7x's 64 MiB physical VMEM.
    in_out_bytes = sum(int(a.size) * a.dtype.itemsize for a in inputs)
    in_out_bytes += sum(int(jnp.prod(jnp.array(s.shape))) * 4 for s in out_shape)
    vmem_limit = int(min(64 * 1024 * 1024, max(8 * 1024 * 1024, 4 * in_out_bytes)))

    vmem = pl.BlockSpec(memory_space=pltpu.MemorySpace.VMEM)
    return pl.pallas_call(
        fused_hetero_sage_kernel,
        out_shape=out_shape,
        in_specs=[vmem] * len(inputs),
        out_specs=(vmem, vmem),
        compiler_params=pltpu.CompilerParams(vmem_limit_bytes=vmem_limit),
    )(*inputs)


# --------------------------------------------------------------------------
# Parameters (decoder pre-folded into layer 2, zero-padded, bf16 for the MXU)
# --------------------------------------------------------------------------
def init_params(key, f_cell, f_drug, hidden):
    fc_p = _ceil_to(f_cell, LANE)
    fd_p = _ceil_to(f_drug, LANE)
    h_p = _ceil_to(hidden, LANE)
    ks = jax.random.split(key, 14)

    def lin_w(k, fan_in, fan_out):
        bound = 1.0 / jnp.sqrt(fan_in)
        return jax.random.uniform(k, (fan_in, fan_out), jnp.float32, -bound, bound)

    def lin_b(k, fan_in, fan_out):
        # torch.nn.Linear-style bias init U(-1/sqrt(fan_in), 1/sqrt(fan_in))
        bound = 1.0 / jnp.sqrt(fan_in)
        return jax.random.uniform(k, (1, fan_out), jnp.float32, -bound, bound)

    # raw (unpadded, f32) weights, matching PyG SAGEConv (lin_l has bias, lin_r none)
    wl1_cd = lin_w(ks[0], f_cell, hidden)
    wr1_cd = lin_w(ks[1], f_drug, hidden)
    b1_cd = lin_b(ks[2], f_cell, hidden)
    wl1_dc = lin_w(ks[3], f_drug, hidden)
    wr1_dc = lin_w(ks[4], f_cell, hidden)
    b1_dc = lin_b(ks[5], f_drug, hidden)
    wl2_cd = lin_w(ks[6], hidden, hidden)
    wr2_cd = lin_w(ks[7], hidden, hidden)
    b2_cd = lin_b(ks[8], hidden, hidden)
    wl2_dc = lin_w(ks[9], hidden, hidden)
    wr2_dc = lin_w(ks[10], hidden, hidden)
    b2_dc = lin_b(ks[11], hidden, hidden)

    # decoder Linear(2*hidden, 1)
    w_dec = lin_w(ks[12], 2 * hidden, 1)
    bound = 1.0 / jnp.sqrt(2 * hidden)
    b_dec = jax.random.uniform(ks[13], (), jnp.float32, -bound, bound)
    wc = w_dec[:hidden, :]          # (H, 1) cell half
    wd = w_dec[hidden:, :]          # (H, 1) drug half

    p = {}
    # layer 1 (bf16 padded weights, f32 biases)
    p['wl1_cd'] = _pad2d(wl1_cd, fc_p, h_p).astype(jnp.bfloat16)
    p['wr1_cd'] = _pad2d(wr1_cd, fd_p, h_p).astype(jnp.bfloat16)
    p['b1_cd'] = _pad2d(b1_cd, 1, h_p)
    p['wl1_dc'] = _pad2d(wl1_dc, fd_p, h_p).astype(jnp.bfloat16)
    p['wr1_dc'] = _pad2d(wr1_dc, fc_p, h_p).astype(jnp.bfloat16)
    p['b1_dc'] = _pad2d(b1_dc, 1, h_p)

    # layer 2 folded with the decoder halves (no nonlinearity in between):
    #   s_drug = agg2 @ (Wl2_cd @ wd) + h_drug @ (Wr2_cd @ wd) + b2_cd @ wd
    #   s_cell = agg2 @ (Wl2_dc @ wc) + h_cell @ (Wr2_dc @ wc) + b2_dc @ wc
    # Folded weights padded to lane-dense (H_pad, 128) slabs (col 0 real).
    p['wl2cd_f'] = _pad2d(wl2_cd @ wd, h_p, LANE).astype(jnp.bfloat16)
    p['wr2cd_f'] = _pad2d(wr2_cd @ wd, h_p, LANE).astype(jnp.bfloat16)
    p['b2cd_f'] = _pad2d(b2_cd @ wd, 1, LANE)
    p['wl2dc_f'] = _pad2d(wl2_dc @ wc, h_p, LANE).astype(jnp.bfloat16)
    p['wr2dc_f'] = _pad2d(wr2_dc @ wc, h_p, LANE).astype(jnp.bfloat16)
    p['b2dc_f'] = _pad2d(b2_dc @ wc, 1, LANE)
    p['dec_b'] = b_dec
    return p


def build_adjacency(dst_idx, src_idx, n_dst, n_src):
    """Raw adjacency counting edge multiplicities + f32 inverse in-degree."""
    a = jnp.zeros((n_dst, n_src), jnp.float32).at[dst_idx, src_idx].add(1.0)
    deg = a.sum(axis=1, keepdims=True)
    inv_deg = 1.0 / jnp.maximum(deg, 1.0)
    return a, inv_deg


def model_forward(params, x_dict, adj_dc, inv_deg_d, adj_cd, inv_deg_c,
                  edge_label_index):
    n_cell, f_cell = x_dict['cellline'].shape
    n_drug, f_drug = x_dict['drug'].shape
    nc_p = _ceil_to(n_cell, LANE)
    nd_p = _ceil_to(n_drug, LANE)
    fc_p = _ceil_to(f_cell, LANE)
    fd_p = _ceil_to(f_drug, LANE)

    # zero-pad to lane-dense shapes; MXU operands in bf16, 1/deg stays f32.
    x_cell = _pad2d(x_dict['cellline'], nc_p, fc_p).astype(jnp.bfloat16)
    x_drug = _pad2d(x_dict['drug'], nd_p, fd_p).astype(jnp.bfloat16)
    adj_dc_p = _pad2d(adj_dc, nd_p, nc_p).astype(jnp.bfloat16)
    adj_cd_p = _pad2d(adj_cd, nc_p, nd_p).astype(jnp.bfloat16)
    inv_d_p = _pad2d(inv_deg_d, nd_p, 1)
    inv_c_p = _pad2d(inv_deg_c, nc_p, 1)

    # single fused kernel: encoder + (layer-2 ∘ decoder) per-node scores
    s_cell, s_drug = fused_forward(adj_dc_p, adj_cd_p, inv_d_p, inv_c_p,
                                   x_cell, x_drug, params)

    # per-edge score = s_cell[row] + s_drug[col] + b  (cheap gather + add)
    row, col = edge_label_index
    return s_cell[row, 0] + s_drug[col, 0] + params['dec_b']   # .view(-1)


if __name__ == "__main__":
    key = jax.random.PRNGKey(0)
    k_feat_c, k_feat_d, k_edges, k_labels, k_params = jax.random.split(key, 5)

    # small synthetic heterogeneous graph
    n_cell, n_drug = 12, 10
    f_cell, f_drug = 16, 8
    hidden = 32
    n_edges = 24
    n_label_edges = 8

    x_dict = {
        'cellline': jax.random.normal(k_feat_c, (n_cell, f_cell), jnp.float32),
        'drug': jax.random.normal(k_feat_d, (n_drug, f_drug), jnp.float32),
    }

    # message-passing edges: cellline -> drug, plus reverse (ToUndirected)
    e_cell = jax.random.randint(k_edges, (n_edges,), 0, n_cell)
    e_drug = jax.random.randint(jax.random.fold_in(k_edges, 1), (n_edges,), 0, n_drug)
    adj_dc, inv_deg_d = build_adjacency(e_drug, e_cell, n_drug, n_cell)
    adj_cd, inv_deg_c = build_adjacency(e_cell, e_drug, n_cell, n_drug)

    # supervision edges for the decoder
    lab_row = jax.random.randint(k_labels, (n_label_edges,), 0, n_cell)
    lab_col = jax.random.randint(jax.random.fold_in(k_labels, 1), (n_label_edges,), 0, n_drug)
    edge_label_index = (lab_row, lab_col)

    params = init_params(k_params, f_cell, f_drug, hidden)

    out = model_forward(params, x_dict, adj_dc, inv_deg_d, adj_cd, inv_deg_c,
                        edge_label_index)
    out = jax.block_until_ready(out)
    assert out.shape == (n_label_edges,)
    assert bool(jnp.all(jnp.isfinite(out)))
    print("KERNEL_OK")
</pallas_src>

<mosaic_0001>
module attributes {stable_mosaic.version = 11 : i64} {
  func.func @fused_hetero_sage_kernel(%arg0: memref<128x128xbf16, #tpu.memory_space<vmem>>, %arg1: memref<128x128xbf16, #tpu.memory_space<vmem>>, %arg2: memref<128x1xf32, #tpu.memory_space<vmem>>, %arg3: memref<128x1xf32, #tpu.memory_space<vmem>>, %arg4: memref<128x128xbf16, #tpu.memory_space<vmem>>, %arg5: memref<128x128xbf16, #tpu.memory_space<vmem>>, %arg6: memref<128x128xbf16, #tpu.memory_space<vmem>>, %arg7: memref<128x128xbf16, #tpu.memory_space<vmem>>, %arg8: memref<1x128xf32, #tpu.memory_space<vmem>>, %arg9: memref<128x128xbf16, #tpu.memory_space<vmem>>, %arg10: memref<128x128xbf16, #tpu.memory_space<vmem>>, %arg11: memref<1x128xf32, #tpu.memory_space<vmem>>, %arg12: memref<128x128xbf16, #tpu.memory_space<vmem>>, %arg13: memref<128x128xbf16, #tpu.memory_space<vmem>>, %arg14: memref<1x128xf32, #tpu.memory_space<vmem>>, %arg15: memref<128x128xbf16, #tpu.memory_space<vmem>>, %arg16: memref<128x128xbf16, #tpu.memory_space<vmem>>, %arg17: memref<1x128xf32, #tpu.memory_space<vmem>>, %arg18: memref<128x128xf32, #tpu.memory_space<vmem>>, %arg19: memref<128x128xf32, #tpu.memory_space<vmem>>) attributes {dimension_semantics = [], scalar_prefetch = 0 : i64, scratch_operands = 0 : i64, tpu.core_type = #tpu.core_type<tc>} {
    %c0 = arith.constant 0 : index
    %c0_0 = arith.constant 0 : index
    %0 = vector.load %arg0[%c0, %c0_0] : memref<128x128xbf16, #tpu.memory_space<vmem>>, vector<128x128xbf16>
    %c0_1 = arith.constant 0 : index
    %c0_2 = arith.constant 0 : index
    %1 = vector.load %arg1[%c0_1, %c0_2] : memref<128x128xbf16, #tpu.memory_space<vmem>>, vector<128x128xbf16>
    %c0_3 = arith.constant 0 : index
    %c0_4 = arith.constant 0 : index
    %2 = vector.load %arg2[%c0_3, %c0_4] : memref<128x1xf32, #tpu.memory_space<vmem>>, vector<128x1xf32>
    %c0_5 = arith.constant 0 : index
    %c0_6 = arith.constant 0 : index
    %3 = vector.load %arg3[%c0_5, %c0_6] : memref<128x1xf32, #tpu.memory_space<vmem>>, vector<128x1xf32>
    %c0_7 = arith.constant 0 : index
    %c0_8 = arith.constant 0 : index
    %4 = vector.load %arg4[%c0_7, %c0_8] : memref<128x128xbf16, #tpu.memory_space<vmem>>, vector<128x128xbf16>
    %c0_9 = arith.constant 0 : index
    %c0_10 = arith.constant 0 : index
    %5 = vector.load %arg5[%c0_9, %c0_10] : memref<128x128xbf16, #tpu.memory_space<vmem>>, vector<128x128xbf16>
    %cst = arith.constant dense<0.000000e+00> : vector<128x128xf32>
    %6 = tpu.matmul %0, %4, %cst {dimension_numbers = #tpu.dot_dimension_numbers<[1], [0], [0], [1], [0, 0, 1, 1], [], []>} : vector<128x128xbf16>, vector<128x128xbf16>, vector<128x128xf32> -> vector<128x128xf32>
    %7 = vector.broadcast %2 : vector<128x1xf32> to vector<128x128xf32>
    %8 = arith.mulf %6, %7 : vector<128x128xf32>
    %9 = arith.truncf %8 : vector<128x128xf32> to vector<128x128xbf16>
    %c0_11 = arith.constant 0 : index
    %c0_12 = arith.constant 0 : index
    %10 = vector.load %arg6[%c0_11, %c0_12] : memref<128x128xbf16, #tpu.memory_space<vmem>>, vector<128x128xbf16>
    %cst_13 = arith.constant dense<0.000000e+00> : vector<128x128xf32>
    %11 = tpu.matmul %9, %10, %cst_13 {dimension_numbers = #tpu.dot_dimension_numbers<[1], [0], [0], [1], [0, 0, 1, 1], [], []>} : vector<128x128xbf16>, vector<128x128xbf16>, vector<128x128xf32> -> vector<128x128xf32>
    %c0_14 = arith.constant 0 : index
    %c0_15 = arith.constant 0 : index
    %12 = vector.load %arg7[%c0_14, %c0_15] : memref<128x128xbf16, #tpu.memory_space<vmem>>, vector<128x128xbf16>
    %cst_16 = arith.constant dense<0.000000e+00> : vector<128x128xf32>
    %13 = tpu.matmul %5, %12, %cst_16 {dimension_numbers = #tpu.dot_dimension_numbers<[1], [0], [0], [1], [0, 0, 1, 1], [], []>} : vector<128x128xbf16>, vector<128x128xbf16>, vector<128x128xf32> -> vector<128x128xf32>
    %14 = arith.addf %11, %13 : vector<128x128xf32>
    %c0_17 = arith.constant 0 : index
    %c0_18 = arith.constant 0 : index
    %15 = vector.load %arg8[%c0_17, %c0_18] : memref<1x128xf32, #tpu.memory_space<vmem>>, vector<1x128xf32>
    %16 = vector.broadcast %15 : vector<1x128xf32> to vector<128x128xf32>
    %17 = arith.addf %14, %16 : vector<128x128xf32>
    %cst_19 = arith.constant 0.000000e+00 : f32
    %18 = vector.broadcast %cst_19 : f32 to vector<128x128xf32>
    %19 = arith.maximumf %17, %18 : vector<128x128xf32>
    %20 = arith.truncf %19 : vector<128x128xf32> to vector<128x128xbf16>
    %cst_20 = arith.constant dense<0.000000e+00> : vector<128x128xf32>
    %21 = tpu.matmul %1, %5, %cst_20 {dimension_numbers = #tpu.dot_dimension_numbers<[1], [0], [0], [1], [0, 0, 1, 1], [], []>} : vector<128x128xbf16>, vector<128x128xbf16>, vector<128x128xf32> -> vector<128x128xf32>
    %22 = vector.broadcast %3 : vector<128x1xf32> to vector<128x128xf32>
    %23 = arith.mulf %21, %22 : vector<128x128xf32>
    %24 = arith.truncf %23 : vector<128x128xf32> to vector<128x128xbf16>
    %c0_21 = arith.constant 0 : index
    %c0_22 = arith.constant 0 : index
    %25 = vector.load %arg9[%c0_21, %c0_22] : memref<128x128xbf16, #tpu.memory_space<vmem>>, vector<128x128xbf16>
    %cst_23 = arith.constant dense<0.000000e+00> : vector<128x128xf32>
    %26 = tpu.matmul %24, %25, %cst_23 {dimension_numbers = #tpu.dot_dimension_numbers<[1], [0], [0], [1], [0, 0, 1, 1], [], []>} : vector<128x128xbf16>, vector<128x128xbf16>, vector<128x128xf32> -> vector<128x128xf32>
    %c0_24 = arith.constant 0 : index
    %c0_25 = arith.constant 0 : index
    %27 = vector.load %arg10[%c0_24, %c0_25] : memref<128x128xbf16, #tpu.memory_space<vmem>>, vector<128x128xbf16>
    %cst_26 = arith.constant dense<0.000000e+00> : vector<128x128xf32>
    %28 = tpu.matmul %4, %27, %cst_26 {dimension_numbers = #tpu.dot_dimension_numbers<[1], [0], [0], [1], [0, 0, 1, 1], [], []>} : vector<128x128xbf16>, vector<128x128xbf16>, vector<128x128xf32> -> vector<128x128xf32>
    %29 = arith.addf %26, %28 : vector<128x128xf32>
    %c0_27 = arith.constant 0 : index
    %c0_28 = arith.constant 0 : index
    %30 = vector.load %arg11[%c0_27, %c0_28] : memref<1x128xf32, #tpu.memory_space<vmem>>, vector<1x128xf32>
    %31 = vector.broadcast %30 : vector<1x128xf32> to vector<128x128xf32>
    %32 = arith.addf %29, %31 : vector<128x128xf32>
    %cst_29 = arith.constant 0.000000e+00 : f32
    %33 = vector.broadcast %cst_29 : f32 to vector<128x128xf32>
    %34 = arith.maximumf %32, %33 : vector<128x128xf32>
    %35 = arith.truncf %34 : vector<128x128xf32> to vector<128x128xbf16>
    %cst_30 = arith.constant dense<0.000000e+00> : vector<128x128xf32>
    %36 = tpu.matmul %0, %35, %cst_30 {dimension_numbers = #tpu.dot_dimension_numbers<[1], [0], [0], [1], [0, 0, 1, 1], [], []>} : vector<128x128xbf16>, vector<128x128xbf16>, vector<128x128xf32> -> vector<128x128xf32>
    %37 = vector.broadcast %2 : vector<128x1xf32> to vector<128x128xf32>
    %38 = arith.mulf %36, %37 : vector<128x128xf32>
    %39 = arith.truncf %38 : vector<128x128xf32> to vector<128x128xbf16>
    %c0_31 = arith.constant 0 : index
    %c0_32 = arith.constant 0 : index
    %40 = vector.load %arg12[%c0_31, %c0_32] : memref<128x128xbf16, #tpu.memory_space<vmem>>, vector<128x128xbf16>
    %cst_33 = arith.constant dense<0.000000e+00> : vector<128x128xf32>
    %41 = tpu.matmul %39, %40, %cst_33 {dimension_numbers = #tpu.dot_dimension_numbers<[1], [0], [0], [1], [0, 0, 1, 1], [], []>} : vector<128x128xbf16>, vector<128x128xbf16>, vector<128x128xf32> -> vector<128x128xf32>
    %c0_34 = arith.constant 0 : index
    %c0_35 = arith.constant 0 : index
    %42 = vector.load %arg13[%c0_34, %c0_35] : memref<128x128xbf16, #tpu.memory_space<vmem>>, vector<128x128xbf16>
    %cst_36 = arith.constant dense<0.000000e+00> : vector<128x128xf32>
    %43 = tpu.matmul %20, %42, %cst_36 {dimension_numbers = #tpu.dot_dimension_numbers<[1], [0], [0], [1], [0, 0, 1, 1], [], []>} : vector<128x128xbf16>, vector<128x128xbf16>, vector<128x128xf32> -> vector<128x128xf32>
    %44 = arith.addf %41, %43 : vector<128x128xf32>
    %c0_37 = arith.constant 0 : index
    %c0_38 = arith.constant 0 : index
    %45 = vector.load %arg14[%c0_37, %c0_38] : memref<1x128xf32, #tpu.memory_space<vmem>>, vector<1x128xf32>
    %46 = vector.broadcast %45 : vector<1x128xf32> to vector<128x128xf32>
    %47 = arith.addf %44, %46 : vector<128x128xf32>
    %c0_39 = arith.constant 0 : index
    %c0_40 = arith.constant 0 : index
    %48 = vector.load %arg19[%c0_39, %c0_40] : memref<128x128xf32, #tpu.memory_space<vmem>>, vector<128x128xf32>
    tpu.vector_store %arg19[%c0_39, %c0_40], %47 {strides = array<i32>} : memref<128x128xf32, #tpu.memory_space<vmem>>, vector<128x128xf32>,
    %cst_41 = arith.constant dense<0.000000e+00> : vector<128x128xf32>
    %49 = tpu.matmul %1, %20, %cst_41 {dimension_numbers = #tpu.dot_dimension_numbers<[1], [0], [0], [1], [0, 0, 1, 1], [], []>} : vector<128x128xbf16>, vector<128x128xbf16>, vector<128x128xf32> -> vector<128x128xf32>
    %50 = vector.broadcast %3 : vector<128x1xf32> to vector<128x128xf32>
    %51 = arith.mulf %49, %50 : vector<128x128xf32>
    %52 = arith.truncf %51 : vector<128x128xf32> to vector<128x128xbf16>
    %c0_42 = arith.constant 0 : index
    %c0_43 = arith.constant 0 : index
    %53 = vector.load %arg15[%c0_42, %c0_43] : memref<128x128xbf16, #tpu.memory_space<vmem>>, vector<128x128xbf16>
    %cst_44 = arith.constant dense<0.000000e+00> : vector<128x128xf32>
    %54 = tpu.matmul %52, %53, %cst_44 {dimension_numbers = #tpu.dot_dimension_numbers<[1], [0], [0], [1], [0, 0, 1, 1], [], []>} : vector<128x128xbf16>, vector<128x128xbf16>, vector<128x128xf32> -> vector<128x128xf32>
    %c0_45 = arith.constant 0 : index
    %c0_46 = arith.constant 0 : index
    %55 = vector.load %arg16[%c0_45, %c0_46] : memref<128x128xbf16, #tpu.memory_space<vmem>>, vector<128x128xbf16>
    %cst_47 = arith.constant dense<0.000000e+00> : vector<128x128xf32>
    %56 = tpu.matmul %35, %55, %cst_47 {dimension_numbers = #tpu.dot_dimension_numbers<[1], [0], [0], [1], [0, 0, 1, 1], [], []>} : vector<128x128xbf16>, vector<128x128xbf16>, vector<128x128xf32> -> vector<128x128xf32>
    %57 = arith.addf %54, %56 : vector<128x128xf32>
    %c0_48 = arith.constant 0 : index
    %c0_49 = arith.constant 0 : index
    %58 = vector.load %arg17[%c0_48, %c0_49] : memref<1x128xf32, #tpu.memory_space<vmem>>, vector<1x128xf32>
    %59 = vector.broadcast %58 : vector<1x128xf32> to vector<128x128xf32>
    %60 = arith.addf %57, %59 : vector<128x128xf32>
    %c0_50 = arith.constant 0 : index
    %c0_51 = arith.constant 0 : index
    %61 = vector.load %arg18[%c0_50, %c0_51] : memref<128x128xf32, #tpu.memory_space<vmem>>, vector<128x128xf32>
    tpu.vector_store %arg18[%c0_50, %c0_51], %60 {strides = array<i32>} : memref<128x128xf32, #tpu.memory_space<vmem>>, vector<128x128xf32>,
    return
  }
}

</mosaic_0001>

<bundles_post_ra>
// kernel: tpu_custom_call.1
= control target key start
LH: loop header
LB: loop body
LE: loop exit
PB: predicated region body
PF: predicated region fallthrough
CT: control target
= control target key end

     0   :  { %s4523_s0 = inlined_call_operand.vmem [shape: bf16[128,128], index: 0, kind: input, shape index: {}]   ;;  %s4524_s1 = inlined_call_operand.vmem [shape: bf16[128,128], index: 1, kind: input, shape index: {}]   ;;  %s4525_s2 = inlined_call_operand.vmem [shape: f32[128,1], index: 2, kind: input, shape index: {}]   ;;  %s4526_s3 = inlined_call_operand.vmem [shape: f32[128,1], index: 3, kind: input, shape index: {}]   ;;  %s4527_s4 = inlined_call_operand.vmem [shape: bf16[128,128], index: 4, kind: input, shape index: {}]   ;;  %s4528_s5 = inlined_call_operand.vmem [shape: bf16[128,128], index: 5, kind: input, shape index: {}]   ;;  %s4529_s6 = inlined_call_operand.hbm [shape: bf16[128,128], index: 6, kind: input, shape index: {}]   ;;  %s4530_s7 = inlined_call_operand.hbm [shape: bf16[128,128], index: 7, kind: input, shape index: {}]   ;;  %s4531_s8 = inlined_call_operand.vmem [shape: f32[1,128], index: 8, kind: input, shape index: {}]   ;;  %s4532_s9 = inlined_call_operand.hbm [shape: bf16[128,128], index: 9, kind: input, shape index: {}]   ;;  %s4533_s10 = inlined_call_operand.hbm [shape: bf16[128,128], index: 10, kind: input, shape index: {}]   ;;  %s4534_s11 = inlined_call_operand.vmem [shape: f32[1,128], index: 11, kind: input, shape index: {}]   ;;  %s4535_s12 = inlined_call_operand.hbm [shape: bf16[128,128], index: 12, kind: input, shape index: {}]   ;;  %s4536_s13 = inlined_call_operand.hbm [shape: bf16[128,128], index: 13, kind: input, shape index: {}]   ;;  %s4537_s14 = inlined_call_operand.vmem [shape: f32[1,128], index: 14, kind: input, shape index: {}]   ;;  %s4538_s15 = inlined_call_operand.hbm [shape: bf16[128,128], index: 15, kind: input, shape index: {}]   ;;  %s4539_s16 = inlined_call_operand.hbm [shape: bf16[128,128], index: 16, kind: input, shape index: {}]   ;;  %s4540_s17 = inlined_call_operand.vmem [shape: f32[1,128], index: 17, kind: input, shape index: {}]   ;;  %s4541_s18 = inlined_call_operand.hbm [shape: f32[128,128], index: 18, kind: output, shape index: {0}]   ;;  %s4542_s19 = inlined_call_operand.hbm [shape: f32[128,128], index: 19, kind: output, shape index: {1}]  }
   0x1   :  { %4562 = sst [smem:[#allocation41_spill]] %s4523_s0 }
   0x2   :  { %4563 = sst [smem:[#allocation42_spill]] %s4524_s1 }
   0x3   :  { %4564 = sst [smem:[#allocation43_spill]] %s4525_s2 }
   0x4   :  { %4565 = sst [smem:[#allocation44_spill]] %s4526_s3 }
   0x5   :  { %25 = vsyncpa [#allocation3], 0 }
   0x6   :  { %26 = vsyncpa [#allocation6], 0 }
   0x7   :  { %27 = vsyncpa [#allocation9], 0 }
   0x8   :  { %28 = vsyncpa [#allocation12], 0 }
   0x9   :  { %29 = vsyncpa [#allocation15], 0 }
   0xa   :  { %30 = vsyncpa [#allocation4], 0 }
   0xb   :  { %31 = vsyncpa [#allocation18], 0  ;;  %s3620_s0 = smov [#allocation5]   ;;  %s3621_s20 = smov [#allocation8]  }
   0xc   :  { %s61_s30 = sshll.u32 %s3620_s0, 4  ;;  %s87_s21 = sshll.u32 %s3621_s20, 4  ;;  %s62_s30 = int_to_ptr.vmem [resolvable:$true] %s61_s30  ;;  %s88_s21 = int_to_ptr.vmem [resolvable:$true] %s87_s21 }
   0xd   :  { %s3414_s1 = scalar_lea.vmem %s62_s30, 1024  ;;  %p3419_p1 = scmp.lt.s32.totalorder %s62_s30, %s62_s30 }
   0xe   :  { %p3415_p0 = scmp.ne.s32.totalorder %s62_s30, %s3414_s1  ;;  %p3420_p2 = scmp.lt.s32.totalorder %s3414_s1, %s3414_s1 }
  0x10   :  { %p3421_p3 = por %p3420_p2, %p3419_p1 }
  0x12   :  { %p3422_p4 = pnand %p3421_p3, %p3415_p0 }
  0x14   :  { %3425 = shalt.err (!%p3422_p4)
}
  0x15   :  { %s3622_s22 = smov 64   ;;  %s3623_s2 = smov 4  }
  0x16   :  { %67 = dma.hbm_to_vmem [thread:$0]  %s4530_s7, 1024, %s62_s30, [#allocation6], %s3622_s22, %s3622_s22, %s3623_s2  }
  0x17   :  { %s3434_s25 = scalar_lea.vmem %s88_s21, 1024  ;;  %p3439_p6 = scmp.lt.s32.totalorder %s88_s21, %s88_s21 }
  0x18   :  { %p3435_p5 = scmp.ne.s32.totalorder %s88_s21, %s3434_s25  ;;  %p3440_p7 = scmp.lt.s32.totalorder %s3434_s25, %s3434_s25 }
  0x1a   :  { %p3441_p8 = por %p3440_p7, %p3439_p6 }
  0x1c   :  { %p3442_p9 = pnand %p3441_p8, %p3435_p5 }
  0x1e   :  { %3445 = shalt.err (!%p3442_p9)
}
  0x1f   :  { %93 = dma.hbm_to_vmem [thread:$0]  %s4533_s10, 1024, %s88_s21, [#allocation9], %s3622_s22, %s3622_s22, %s3623_s2  }
  0x20   :  { %s3624_s27 = smov [#allocation11]   ;;  %s3625_s29 = smov [#allocation2]  }
  0x21   :  { %s113_s28 = sshll.u32 %s3624_s27, 4  ;;  %s49_s0 = sshll.u32 %s3625_s29, 4  ;;  %s114_s28 = int_to_ptr.vmem [resolvable:$true] %s113_s28  ;;  %s50_s0 = int_to_ptr.vmem [resolvable:$true] %s49_s0 }
  0x22   :  { %s3454_s7 = scalar_lea.vmem %s114_s28, 1024  ;;  %p3459_p11 = scmp.lt.s32.totalorder %s114_s28, %s114_s28 }
  0x23   :  { %p3455_p10 = scmp.ne.s32.totalorder %s114_s28, %s3454_s7  ;;  %p3460_p12 = scmp.lt.s32.totalorder %s3454_s7, %s3454_s7 }
  0x25   :  { %p3461_p13 = por %p3460_p12, %p3459_p11 }
  0x27   :  { %p3462_p0 = pnand %p3461_p13, %p3455_p10 }
  0x29   :  { %3465 = shalt.err (!%p3462_p0)
}
  0x2a   :  { %119 = dma.hbm_to_vmem [thread:$0]  %s4536_s13, 1024, %s114_s28, [#allocation12], %s3622_s22, %s3622_s22, %s3623_s2  }
  0x2b   :  { %s3474_s10 = scalar_lea.vmem %s50_s0, 1024  ;;  %p3479_p2 = scmp.lt.s32.totalorder %s50_s0, %s50_s0 }
  0x2c   :  { %p3475_p1 = scmp.ne.s32.totalorder %s50_s0, %s3474_s10  ;;  %p3480_p3 = scmp.lt.s32.totalorder %s3474_s10, %s3474_s10 }
  0x2e   :  { %p3481_p4 = por %p3480_p3, %p3479_p2 }
  0x30   :  { %p3482_p5 = pnand %p3481_p4, %p3475_p1 }
  0x32   :  { %3485 = shalt.err (!%p3482_p5)
}
  0x33   :  { %55 = dma.hbm_to_vmem [thread:$0]  %s4529_s6, 1024, %s50_s0, [#allocation3], %s3622_s22, %s3622_s22, %s3623_s2  }
  0x34   :  { %s3626_s23 = smov [#allocation7]   ;;  %s3627_s25 = smov [#allocation10]  }
  0x35   :  { %s75_s24 = sshll.u32 %s3626_s23, 4  ;;  %s101_s3 = sshll.u32 %s3627_s25, 4  ;;  %s76_s24 = int_to_ptr.vmem [resolvable:$true] %s75_s24  ;;  %s102_s3 = int_to_ptr.vmem [resolvable:$true] %s101_s3 }
  0x36   :  { %s3494_s13 = scalar_lea.vmem %s76_s24, 1024  ;;  %p3499_p7 = scmp.lt.s32.totalorder %s76_s24, %s76_s24 }
  0x37   :  { %p3495_p6 = scmp.ne.s32.totalorder %s76_s24, %s3494_s13  ;;  %p3500_p8 = scmp.lt.s32.totalorder %s3494_s13, %s3494_s13 }
  0x39   :  { %p3501_p9 = por %p3500_p8, %p3499_p7 }
  0x3b   :  { %p3502_p10 = pnand %p3501_p9, %p3495_p6 }
  0x3d   :  { %3505 = shalt.err (!%p3502_p10)
}
  0x3e   :  { %81 = dma.hbm_to_vmem [thread:$0]  %s4532_s9, 1024, %s76_s24, [#allocation6], %s3622_s22, %s3622_s22, %s3623_s2  }
  0x3f   :  { %s3514_s6 = scalar_lea.vmem %s102_s3, 1024  ;;  %p3519_p12 = scmp.lt.s32.totalorder %s102_s3, %s102_s3 }
  0x40   :  { %p3515_p11 = scmp.ne.s32.totalorder %s102_s3, %s3514_s6  ;;  %p3520_p13 = scmp.lt.s32.totalorder %s3514_s6, %s3514_s6 }
  0x42   :  { %p3521_p0 = por %p3520_p13, %p3519_p12 }
  0x44   :  { %p3522_p1 = pnand %p3521_p0, %p3515_p11 }
  0x46   :  { %3525 = shalt.err (!%p3522_p1)
}
  0x47   :  { %107 = dma.hbm_to_vmem [thread:$0]  %s4535_s12, 1024, %s102_s3, [#allocation9], %s3622_s22, %s3622_s22, %s3623_s2  }
  0x48   :  { %s3628_s0 = smov [#allocation13]   ;;  %s3629_s30 = smov [#allocation14]  }
  0x49   :  { %s127_s7 = sshll.u32 %s3628_s0, 4  ;;  %s139_s20 = sshll.u32 %s3629_s30, 4  ;;  %s128_s7 = int_to_ptr.vmem [resolvable:$true] %s127_s7  ;;  %s140_s20 = int_to_ptr.vmem [resolvable:$true] %s139_s20 }
  0x4a   :  { %s3534_s9 = scalar_lea.vmem %s128_s7, 1024  ;;  %p3539_p3 = scmp.lt.s32.totalorder %s128_s7, %s128_s7 }
  0x4b   :  { %p3535_p2 = scmp.ne.s32.totalorder %s128_s7, %s3534_s9  ;;  %p3540_p4 = scmp.lt.s32.totalorder %s3534_s9, %s3534_s9 }
  0x4d   :  { %p3541_p5 = por %p3540_p4, %p3539_p3 }
  0x4f   :  { %p3542_p6 = pnand %p3541_p5, %p3535_p2 }
  0x51   :  { %3545 = shalt.err (!%p3542_p6)
}
  0x52   :  { %133 = dma.hbm_to_vmem [thread:$0]  %s4538_s15, 1024, %s128_s7, [#allocation12], %s3622_s22, %s3622_s22, %s3623_s2  }
  0x53   :  { %s3554_s12 = scalar_lea.vmem %s140_s20, 1024  ;;  %p3559_p8 = scmp.lt.s32.totalorder %s140_s20, %s140_s20 }
  0x54   :  { %p3555_p7 = scmp.ne.s32.totalorder %s140_s20, %s3554_s12  ;;  %p3560_p9 = scmp.lt.s32.totalorder %s3554_s12, %s3554_s12 }
  0x56   :  { %p3561_p10 = por %p3560_p9, %p3559_p8 }
  0x58   :  { %p3562_p11 = pnand %p3561_p10, %p3555_p7 }
  0x5a   :  { %3565 = shalt.err (!%p3562_p11)
}
  0x5b   :  { %145 = dma.hbm_to_vmem [thread:$0]  %s4539_s16, 1024, %s140_s20, [#allocation15], %s3622_s22, %s3622_s22, %s3623_s2  }
  0x5c   :  { %3606 = dma.done.wait [#allocation3], 1024  }
  0x5d   :  { %3607 = vsyncadd [#allocation3], 4294966272 }
  0x5e   :  { %3608 = dma.done.wait [#allocation6], 2048  }
  0x5f   :  { %3609 = vsyncadd [#allocation6], 4294965248 }
  0x60   :  { %3610 = dma.done.wait [#allocation9], 2048  }
  0x61   :  { %3611 = vsyncadd [#allocation9], 4294965248 }
  0x62   :  { %3612 = dma.done.wait [#allocation12], 2048  }
  0x63   :  { %3613 = vsyncadd [#allocation12], 4294965248 }
  0x64   :  { %3614 = dma.done.wait [#allocation15], 1024  }
  0x65   :  { %3615 = vsyncadd [#allocation15], 4294966272  ;;  %v3630_v0 = vmov 0   ;;  %v3295_v1 = vld [vmem:[%s4527_s4 + $0x38] sm:$0xff]   ;;  %v3297_v3 = vld [vmem:[%s4527_s4 + $0x30] sm:$0xff]   ;;  %s4566_s7 = sld [smem:[#allocation41_spill]] }
  0x66   :  { %3293 = vset.pattern.permute.xlu0 %v3630_v0  ;;  %3294 = vset.pattern.permute.xlu1 %v3630_v0  ;;  %v3296_v2 = vld [vmem:[#allocation5 + $0x38] sm:$0xff]   ;;  %v3298_v4 = vld [vmem:[#allocation5 + $0x30] sm:$0xff]   ;;  %v3299_v5 = vld [vmem:[%s4527_s4 + $0x28] sm:$0xff]   ;;  %s4567_s15 = sld [smem:[#allocation43_spill]] }
  0x67   :  { %2894 = vmatprep.subr.bf16.mxu0 %v3295_v1  ;;  %2926 = vmatprep.subr.bf16.mxu1 %v3296_v2  ;;  %v3300_v6 = vld [vmem:[#allocation5 + $0x28] sm:$0xff]   ;;  %v3301_v7 = vld [vmem:[%s4527_s4 + $0x20] sm:$0xff]   ;;  %v3303_v9 = vld [vmem:[%s4527_s4 + $0x18] sm:$0xff]   ;;  %s4568_s21 = sld [smem:[#allocation42_spill]] }
  0x68   :  { %2895 = vmatpush3.bf16.msra.mxu0 %v3295_v1  ;;  %2927 = vmatpush3.bf16.msra.mxu1 %v3296_v2  ;;  %v3302_v8 = vld [vmem:[#allocation5 + $0x20] sm:$0xff]   ;;  %v3304_v10 = vld [vmem:[#allocation5 + $0x18] sm:$0xff]   ;;  %v3801_v11 = vld [vmem:[%s4527_s4 + $0x10] sm:$0xff]   ;;  %s4569_s23 = sld [smem:[#allocation44_spill]] }
  0x69   :  { %2896 = vmatprep.subr.bf16.mxu0 %v3297_v3  ;;  %2928 = vmatprep.subr.bf16.mxu1 %v3298_v4  ;;  %v3306_v12 = vld [vmem:[#allocation5 + $0x10] sm:$0xff]   ;;  %v3809_v14 = vld [vmem:[%s4528_s5] sm:$0xff]   ;;  %v3816_v15 = vld [vmem:[%s4527_s4 + $0x8] sm:$0xff]  }
  0x6a   :  { %2942 = vmatprep.mubr.bf16.mxu1 %v3809_v14  ;;  %v3308_v16 = vld [vmem:[#allocation5 + $0x8] sm:$0xff]   ;;  %v3823_v17 = vld [vmem:[%s4527_s4] sm:$0xff]   ;;  %v3839_v22 = vld [vmem:[%s4528_s5 + $0x38] sm:$0xff]  }
  0x6b   :  { %v3311_v13 = vld [vmem:[%s4566_s7] sm:$0xff]   ;;  %v3313_v20 = vld [vmem:[%s4566_s7 + $0x8] sm:$0xff]   ;;  %v3317_v25 = vld [vmem:[%s4566_s7 + $0x10] sm:$0xff]  }
  0x6c   :  { %2897 = vmatpush3.bf16.msra.mxu0 %v3297_v3  ;;  %2929 = vmatpush3.bf16.msra.mxu1 %v3298_v4  ;;  %v3310_v18 = vld [vmem:[#allocation5] sm:$0xff]   ;;  %v207_v21 = vld [vmem:[%s4567_s15 + $0x10] sm:$0xff]  ;;  %v206_v23 = vld [vmem:[%s4567_s15 + $0x8] sm:$0xff] }
  0x6d   :  { %2898 = vmatprep.subr.bf16.mxu0 %v3299_v5  ;;  %2930 = vmatprep.subr.bf16.mxu1 %v3300_v6  ;;  %v205_v19 = vld [vmem:[%s4567_s15] sm:$0xff]  ;;  %v3848_v24 = vld [vmem:[%s4528_s5 + $0x8] sm:$0xff]   ;;  %v208_v26 = vld [vmem:[%s4567_s15 + $0x18] sm:$0xff] }
  0x6e   :  { %2910 = vmatprep.mubr.bf16.mxu0 %v3311_v13  ;;  %464 = vperm.xlu0 %3293, %v205_v19   ;;  %v3318_v27 = vld [vmem:[%s4528_s5 + $0x10] sm:$0xff]   ;;  %v209_v29 = vld [vmem:[%s4567_s15 + $0x20] sm:$0xff]  ;;  %v210_v30 = vld [vmem:[%s4567_s15 + $0x28] sm:$0xff] }
  0x6f   :  { %474 = vperm.xlu1 %3294, %v207_v21   ;;  %v3316_v28 = vld [vmem:[%s4528_s5 + $0x30] sm:$0xff]   ;;  %v3319_v31 = vld [vmem:[%s4566_s7 + $0x18] sm:$0xff]   ;;  %v3321_v32 = vld [vmem:[%s4528_s5 + $0x28] sm:$0xff]  }
  0x70   :  { %2899 = vmatpush3.bf16.msra.mxu0 %v3299_v5  ;;  %2931 = vmatpush3.bf16.msra.mxu1 %v3300_v6  ;;  %v3320_v33 = vld [vmem:[%s4528_s5 + $0x18] sm:$0xff]   ;;  %v3323_v34 = vld [vmem:[%s4566_s7 + $0x20] sm:$0xff]   ;;  %v211_v35 = vld [vmem:[%s4567_s15 + $0x30] sm:$0xff] }
  0x71   :  { %2900 = vmatprep.subr.bf16.mxu0 %v3301_v7  ;;  %2932 = vmatprep.subr.bf16.mxu1 %v3302_v8  ;;  %v212_v36 = vld [vmem:[%s4567_s15 + $0x38] sm:$0xff]  ;;  %v3322_v37 = vld [vmem:[%s4528_s5 + $0x20] sm:$0xff]   ;;  %v214_v39 = vld [vmem:[%s4567_s15 + $0x48] sm:$0xff] }
  0x72   :  { %469 = vperm.xlu0 %3293, %v206_v23   ;;  %v213_v38 = vld [vmem:[%s4567_s15 + $0x40] sm:$0xff]  ;;  %v3324_v40 = vld [vmem:[%s4566_s7 + $0x28] sm:$0xff]   ;;  %v3325_v41 = vld [vmem:[%s4566_s7 + $0x30] sm:$0xff]  }
  0x73   :  { %479 = vperm.xlu1 %3294, %v208_v26   ;;  %v215_v42 = vld [vmem:[%s4567_s15 + $0x50] sm:$0xff]  ;;  %v216_v43 = vld [vmem:[%s4567_s15 + $0x58] sm:$0xff]  ;;  %v217_v44 = vld [vmem:[%s4567_s15 + $0x60] sm:$0xff] }
  0x74   :  { %2901 = vmatpush3.bf16.msra.mxu0 %v3301_v7  ;;  %2933 = vmatpush3.bf16.msra.mxu1 %v3302_v8  ;;  %v218_v45 = vld [vmem:[%s4567_s15 + $0x68] sm:$0xff]  ;;  %v3326_v46 = vld [vmem:[%s4566_s7 + $0x38] sm:$0xff]   ;;  %v219_v47 = vld [vmem:[%s4567_s15 + $0x70] sm:$0xff] }
  0x75   :  { %2902 = vmatprep.subr.bf16.mxu0 %v3303_v9  ;;  %2934 = vmatprep.subr.bf16.mxu1 %v3304_v10  ;;  %v220_v48 = vld [vmem:[%s4567_s15 + $0x78] sm:$0xff]  ;;  %v3928_v49 = vld [vmem:[%s4568_s21] sm:$0xff]   ;;  %v222_v51 = vld [vmem:[%s4569_s23 + $0x8] sm:$0xff] }
  0x76   :  { %484 = vperm.xlu0 %3293, %v209_v29   ;;  %v221_v50 = vld [vmem:[%s4569_s23] sm:$0xff]  ;;  %v223_v52 = vld [vmem:[%s4569_s23 + $0x10] sm:$0xff]  ;;  %v3328_v53 = vld [vmem:[%s4568_s21 + $0x8] sm:$0xff]  }
  0x77   :  { %489 = vperm.xlu1 %3294, %v210_v30   ;;  %v224_v54 = vld [vmem:[%s4569_s23 + $0x18] sm:$0xff]  ;;  %v3329_v56 = vld [vmem:[%s4568_s21 + $0x10] sm:$0xff]   ;;  %v225_v57 = vld [vmem:[%s4569_s23 + $0x20] sm:$0xff] }
  0x78   :  { %2903 = vmatpush3.bf16.msra.mxu0 %v3303_v9  ;;  %2935 = vmatpush3.bf16.msra.mxu1 %v3304_v10  ;;  %v3335_v55 = vld [vmem:[#allocation2 + $0x38] sm:$0xff]   ;;  %v226_v58 = vld [vmem:[%s4569_s23 + $0x28] sm:$0xff]  ;;  %v3336_v59 = vld [vmem:[#allocation2 + $0x30] sm:$0xff]  }
  0x79   :  { %2904 = vmatprep.subr.bf16.mxu0 %v3801_v11  ;;  %2936 = vmatprep.subr.bf16.mxu1 %v3306_v12  ;;  %v227_v60 = vld [vmem:[%s4569_s23 + $0x30] sm:$0xff]  ;;  %v3966_v61 = vld [vmem:[%s4568_s21 + $0x18] sm:$0xff]   ;;  %v3337_v63 = vld [vmem:[#allocation2 + $0x28] sm:$0xff]  }
  0x7a   :  { %494 = vperm.xlu0 %3293, %v211_v35   ;;  %v228_v62 = vld [vmem:[%s4569_s23 + $0x38] sm:$0xff]  ;;  %v3974_v0 = vld [vmem:[%s4568_s21 + $0x20] sm:$0xff]   ;;  %v230_v2 = vld [vmem:[%s4569_s23 + $0x48] sm:$0xff] }
  0x7b   :  { %499 = vperm.xlu1 %3294, %v212_v36   ;;  %v229_v1 = vld [vmem:[%s4569_s23 + $0x40] sm:$0xff]  ;;  %v231_v4 = vld [vmem:[%s4569_s23 + $0x50] sm:$0xff]  ;;  %v3990_v5 = vld [vmem:[%s4568_s21 + $0x28] sm:$0xff]  }
  0x7c   :  { %2905 = vmatpush3.bf16.msra.mxu0 %v3801_v11  ;;  %2937 = vmatpush3.bf16.msra.mxu1 %v3306_v12  ;;  %v3338_v3 = vld [vmem:[#allocation2 + $0x20] sm:$0xff]   ;;  %v232_v6 = vld [vmem:[%s4569_s23 + $0x58] sm:$0xff]  ;;  %v3998_v8 = vld [vmem:[%s4568_s21 + $0x30] sm:$0xff]  }
  0x7d   :  { %2906 = vmatprep.subr.bf16.mxu0 %v3816_v15  ;;  %2938 = vmatprep.subr.bf16.mxu1 %v3308_v16  ;;  %v3339_v7 = vld [vmem:[#allocation2 + $0x18] sm:$0xff]   ;;  %v233_v9 = vld [vmem:[%s4569_s23 + $0x60] sm:$0xff]  ;;  %v234_v10 = vld [vmem:[%s4569_s23 + $0x68] sm:$0xff] }
  0x7e   :  { %504 = vperm.xlu0 %3293, %v213_v38   ;;  %v235_v12 = vld [vmem:[%s4569_s23 + $0x70] sm:$0xff]  ;;  %v4014_v13 = vld [vmem:[%s4568_s21 + $0x38] sm:$0xff]   ;;  %v3342_v19 = vld [vmem:[#allocation2] sm:$0xff]  }
  0x7f   :  { %509 = vperm.xlu1 %3294, %v214_v39   ;;  %v3344_v21 = vld [vmem:[#allocation7 + $0x38] sm:$0xff]   ;;  %v3348_v23 = vld [vmem:[#allocation7 + $0x28] sm:$0xff]   ;;  %v3354_v26 = vld [vmem:[#allocation7 + $0x10] sm:$0xff]  }
  0x80   :  { %2907 = vmatpush3.bf16.msra.mxu0 %v3816_v15  ;;  %2939 = vmatpush3.bf16.msra.mxu1 %v3308_v16  ;;  %v3340_v16 = vld [vmem:[#allocation2 + $0x10] sm:$0xff]   ;;  %v4023_v29 = vld [vmem:[#allocation11 + $0x38] sm:$0xff]  }
  0x81   :  { %2908 = vmatprep.subr.bf16.mxu0 %v3823_v17  ;;  %2940 = vmatprep.subr.bf16.mxu1 %v3310_v18 }
  0x82   :  { %514 = vperm.xlu0 %3293, %v215_v42  }
  0x83   :  { %519 = vperm.xlu1 %3294, %v216_v43  }
  0x84   :  { %2909 = vmatpush3.bf16.msra.mxu0 %v3823_v17  ;;  %2941 = vmatpush3.bf16.msra.mxu1 %v3310_v18  ;;  %v3341_v18 = vld [vmem:[#allocation2 + $0x8] sm:$0xff]  }
  0x85   :  { %2990 = vmatprep.subr.bf16.mxu1 %v3839_v22  ;;  %2958 = vmatprep.subr.bf16.mxu0 %v3335_v55 }
  0x86   :  { %524 = vperm.xlu0 %3293, %v217_v44  }
  0x87   :  { %2911 = vmatmul.mubr.bf16.vlgmr.msra.gmra.mxu0 %v3313_v20  ;;  %2943 = vmatmul.mubr.bf16.vlgmr.msra.gmra.mxu1 %v3848_v24  ;;  %v4020_v20 = vld [vmem:[#allocation8 + $0x38] sm:$0xff]  }
  0x88   :  { %2914 = vmatprep.mubr.bf16.mxu0 %v3317_v25  ;;  %2991 = vmatpush3.bf16.msra.mxu1 %v3839_v22  ;;  %v3352_v25 = vld [vmem:[#allocation7 + $0x18] sm:$0xff]  }
  0x89   :  { %2946 = vmatprep.mubr.bf16.mxu1 %v3318_v27  ;;  %2992 = vmatprep.subr.bf16.mxu1 %v3316_v28 }
  0x8a   :  { %529 = vperm.xlu1 %3294, %v218_v45   ;;  %534 = vperm.xlu0 %3293, %v219_v47  }
  0x8b   :  { %2959 = vmatpush3.bf16.msra.mxu0 %v3335_v55 }
  0x8c   :  { %2993 = vmatpush3.bf16.msra.mxu1 %v3316_v28  ;;  %2960 = vmatprep.subr.bf16.mxu0 %v3336_v59 }
  0x8d   :  { %2994 = vmatprep.subr.bf16.mxu1 %v3321_v32 }
  0x8e   :  { %539 = vperm.xlu1 %3294, %v220_v48   ;;  %1130 = vperm.xlu0 %3293, %v221_v50  }
  0x8f   :  { %2915 = vmatmul.mubr.bf16.gmra.mxu0 %v3319_v31  ;;  %2947 = vmatmul.mubr.bf16.gmra.mxu1 %v3320_v33 }
  0x90   :  { %2918 = vmatprep.mubr.bf16.mxu0 %v3323_v34  ;;  %2995 = vmatpush3.bf16.msra.mxu1 %v3321_v32 }
  0x91   :  { %2950 = vmatprep.mubr.bf16.mxu1 %v3322_v37  ;;  %2996 = vmatprep.subr.bf16.mxu1 %v3322_v37 }
  0x92   :  { %1135 = vperm.xlu1 %3294, %v222_v51   ;;  %1140 = vperm.xlu0 %3293, %v223_v52  }
  0x93   :  { %2961 = vmatpush3.bf16.msra.mxu0 %v3336_v59 }
  0x94   :  { %2997 = vmatpush3.bf16.msra.mxu1 %v3322_v37  ;;  %2962 = vmatprep.subr.bf16.mxu0 %v3337_v63 }
  0x95   :  { %2998 = vmatprep.subr.bf16.mxu1 %v3320_v33 }
  0x96   :  { %1145 = vperm.xlu1 %3294, %v224_v54   ;;  %1150 = vperm.xlu0 %3293, %v225_v57  }
  0x97   :  { %2919 = vmatmul.mubr.bf16.gmra.mxu0 %v3324_v40  ;;  %2951 = vmatmul.mubr.bf16.gmra.mxu1 %v3321_v32 }
  0x98   :  { %2922 = vmatprep.mubr.bf16.mxu0 %v3325_v41  ;;  %2999 = vmatpush3.bf16.msra.mxu1 %v3320_v33 }
  0x99   :  { %2954 = vmatprep.mubr.bf16.mxu1 %v3316_v28  ;;  %3000 = vmatprep.subr.bf16.mxu1 %v3318_v27  ;;  %v3358_v28 = vld [vmem:[#allocation7] sm:$0xff]  }
  0x9a   :  { %1155 = vperm.xlu1 %3294, %v226_v58   ;;  %2963 = vmatpush3.bf16.msra.mxu0 %v3337_v63  ;;  %v3345_v63 = vld [vmem:[#allocation8 + $0x30] sm:$0xff]  }
  0x9b   :  { %1160 = vperm.xlu0 %3293, %v227_v60   ;;  %2964 = vmatprep.subr.bf16.mxu0 %v3338_v3 }
  0x9c   :  { %3001 = vmatpush3.bf16.msra.mxu1 %v3318_v27  ;;  %v3356_v27 = vld [vmem:[#allocation7 + $0x8] sm:$0xff]  }
  0x9d   :  { %3002 = vmatprep.subr.bf16.mxu1 %v3848_v24 }
  0x9e   :  { %1165 = vperm.xlu1 %3294, %v228_v62   ;;  %2965 = vmatpush3.bf16.msra.mxu0 %v3338_v3 }
  0x9f   :  { %2923 = vmatmul.mubr.bf16.gmra.mxu0 %v3326_v46  ;;  %2955 = vmatmul.mubr.bf16.gmra.mxu1 %v3839_v22  ;;  %v3346_v22 = vld [vmem:[#allocation7 + $0x30] sm:$0xff]  }
  0xa0   :  { %3003 = vmatpush3.bf16.msra.mxu1 %v3848_v24  ;;  %3006 = vmatprep.mubr.bf16.mxu1 %v3928_v49  ;;  %v3350_v24 = vld [vmem:[#allocation7 + $0x20] sm:$0xff]  }
  0xa1   :  { %3004 = vmatprep.subr.bf16.mxu1 %v3809_v14  ;;  %1170 = vperm.xlu0 %3293, %v229_v1  }
  0xa2   :  { %1175 = vperm.xlu1 %3294, %v230_v2   ;;  %2966 = vmatprep.subr.bf16.mxu0 %v3339_v7 }
  0xa3   :  { %2967 = vmatpush3.bf16.msra.mxu0 %v3339_v7 }
  0xa4   :  { %3005 = vmatpush3.bf16.msra.mxu1 %v3809_v14  ;;  %v236_v14 = vld [vmem:[%s4569_s23 + $0x78] sm:$0xff]  ;;  %2968 = vmatprep.subr.bf16.mxu0 %v3340_v16 }
  0xa5   :  { %1180 = vperm.xlu0 %3293, %v231_v4   ;;  %3054 = vmatprep.subr.bf16.mxu1 %v3344_v21 }
  0xa6   :  { %1185 = vperm.xlu1 %3294, %v232_v6  }
  0xa7   :  { %3007 = vmatmul.mubr.bf16.vlgmr.msra.gmra.mxu1 %v3328_v53  ;;  %2969 = vmatpush3.bf16.msra.mxu0 %v3340_v16 }
  0xa8   :  { %3010 = vmatprep.mubr.bf16.mxu1 %v3329_v56  ;;  %2970 = vmatprep.subr.bf16.mxu0 %v3341_v18 }
  0xa9   :  { %1190 = vperm.xlu0 %3293, %v233_v9   ;;  %3055 = vmatpush3.bf16.msra.mxu1 %v3344_v21  ;;  %v3347_v9 = vld [vmem:[#allocation8 + $0x28] sm:$0xff]  }
  0xaa   :  { %1195 = vperm.xlu1 %3294, %v234_v10   ;;  %3056 = vmatprep.subr.bf16.mxu1 %v3346_v22 }
  0xab   :  { %2971 = vmatpush3.bf16.msra.mxu0 %v3341_v18 }
  0xac   :  { %2972 = vmatprep.subr.bf16.mxu0 %v3342_v19 }
  0xad   :  { %1200 = vperm.xlu0 %3293, %v235_v12   ;;  %3057 = vmatpush3.bf16.msra.mxu1 %v3346_v22 }
  0xae   :  { %1205 = vperm.xlu1 %3294, %v236_v14   ;;  %3058 = vmatprep.subr.bf16.mxu1 %v3348_v23 }
  0xaf   :  { %3011 = vmatmul.mubr.bf16.gmra.mxu1 %v3966_v61  ;;  %2973 = vmatpush3.bf16.msra.mxu0 %v3342_v19 }
  0xb0   :  { %3014 = vmatprep.mubr.bf16.mxu1 %v3974_v0  ;;  %3022 = vmatprep.subr.bf16.mxu0 %v4020_v20 }
  0xb1   :  { %3059 = vmatpush3.bf16.msra.mxu1 %v3348_v23 }
  0xb2   :  { %3060 = vmatprep.subr.bf16.mxu1 %v3350_v24 }
  0xb5   :  { %3061 = vmatpush3.bf16.msra.mxu1 %v3350_v24  ;;  %v3349_v24 = vld [vmem:[#allocation8 + $0x20] sm:$0xff]  }
  0xb6   :  { %3062 = vmatprep.subr.bf16.mxu1 %v3352_v25 }
  0xb7   :  { %3015 = vmatmul.mubr.bf16.gmra.mxu1 %v3990_v5 }
  0xb8   :  { %3018 = vmatprep.mubr.bf16.mxu1 %v3998_v8 }
  0xb9   :  { %3063 = vmatpush3.bf16.msra.mxu1 %v3352_v25 }
  0xba   :  { %3064 = vmatprep.subr.bf16.mxu1 %v3354_v26 }
  0xbd   :  { %3065 = vmatpush3.bf16.msra.mxu1 %v3354_v26 }
  0xbe   :  { %3066 = vmatprep.subr.bf16.mxu1 %v3356_v27 }
  0xbf   :  { %3019 = vmatmul.mubr.bf16.gmra.mxu1 %v4014_v13 }
  0xc1   :  { %3067 = vmatpush3.bf16.msra.mxu1 %v3356_v27 }
  0xc2   :  { %3068 = vmatprep.subr.bf16.mxu1 %v3358_v28 }
  0xc5   :  { %3069 = vmatpush3.bf16.msra.mxu1 %v3358_v28 }
  0xc6   :  { %3118 = vmatprep.subr.bf16.mxu1 %v4023_v29 }
  0xe9   :  { %v4028_v31 = vpop.permute.xlu0 %464 }
  0xea   :  { %v4026_v30 = vpop.permute.xlu1 %474  ;;  %4571 = vst [vmem:[#allocation27_spill] sm:$0xff] %v4028_v31 }
  0xeb   :  { %4570 = vst [vmem:[#allocation26_spill] sm:$0xff] %v4026_v30 }
  0xed   :  { %v4032_v33 = vpop.permute.xlu0 %469 }
  0xee   :  { %v4030_v32 = vpop.permute.xlu1 %479  ;;  %4572 = vst [vmem:[#allocation28_spill] sm:$0xff] %v4032_v33 }
  0xf1   :  { %v4036_v35 = vpop.permute.xlu0 %484 }
  0xf2   :  { %v4034_v34 = vpop.permute.xlu1 %489  ;;  %4574 = vst [vmem:[#allocation30_spill] sm:$0xff] %v4036_v35 }
  0xf3   :  { %4573 = vst [vmem:[#allocation29_spill] sm:$0xff] %v4034_v34 }
  0xf5   :  { %v4040_v37 = vpop.permute.xlu0 %494 }
  0xf6   :  { %v4038_v36 = vpop.permute.xlu1 %499  ;;  %4576 = vst [vmem:[#allocation32_spill] sm:$0xff] %v4040_v37 }
  0xf7   :  { %4575 = vst [vmem:[#allocation31_spill] sm:$0xff] %v4038_v36 }
  0xf9   :  { %v4044_v39 = vpop.permute.xlu0 %504 }
  0xfa   :  { %v4042_v38 = vpop.permute.xlu1 %509  ;;  %4578 = vst [vmem:[#allocation34_spill] sm:$0xff] %v4044_v39 }
  0xfb   :  { %4577 = vst [vmem:[#allocation33_spill] sm:$0xff] %v4042_v38 }
  0xfd   :  { %v4052_v45 = vpop.permute.xlu0 %514 }
  0xfe   :  { %v4048_v42 = vpop.permute.xlu1 %519  ;;  %4580 = vst [vmem:[#allocation36_spill] sm:$0xff] %v4052_v45 }
  0xff   :  { %4579 = vst [vmem:[#allocation35_spill] sm:$0xff] %v4048_v42 }
 0x101   :  { %v4066_v59 = vpop.permute.xlu0 %524 }
 0x102   :  { %4582 = vst [vmem:[#allocation38_spill] sm:$0xff] %v4066_v59 }
 0x105   :  { %v4061_v54 = vpop.permute.xlu1 %529  ;;  %v4080_v16 = vpop.permute.xlu0 %534 }
 0x106   :  { %4581 = vst [vmem:[#allocation37_spill] sm:$0xff] %v4061_v54  ;;  %4584 = vst [vmem:[#allocation40_spill] sm:$0xff] %v4080_v16 }
 0x109   :  { %v4073_v4 = vpop.permute.xlu1 %539 }
 0x10a   :  { %4583 = vst [vmem:[#allocation39_spill] sm:$0xff] %v4073_v4 }
 0x10d   :  { %v4087_v26 = vpop.permute.xlu1 %1135 }
 0x147   :  { %v2912_v40 = vpop.f32.mrf.mxu0  ;;  %v4046_v41 = vpop.f32.mrf.mxu1 }
 0x148   :  { %v544_v55 = vmul.f32 %v2912_v40, %v4026_v30  ;;  %v4091_v40 = vpop.permute.xlu0 %1130 }
 0x149   :  { %v399_v43 = vpop.f32.mrf.mxu0  ;;  %v4050_v44 = vpop.f32.mrf.mxu1 }
 0x14a   :  { %v542_v51 = vmul.f32 %v4028_v31, %v399_v43 }
 0x14b   :  { %v2913_v46 = vpop.f32.mrf.mxu0  ;;  %v4054_v47 = vpop.f32.mrf.mxu1 }
 0x14c   :  { %v545_v48 = vmul.f32 %v2913_v46, %v4030_v32 }
 0x14d   :  { %v402_v50 = vpop.f32.mrf.mxu0  ;;  %v4059_v53 = vpop.f32.mrf.mxu1 }
 0x14e   :  { %v543_v52 = vmul.f32 %v4032_v33, %v402_v50  ;;  %v559_v60 = vpack.c.bf16 %v545_v48, %v544_v55  ;;  %v3351_v48 = vld [vmem:[#allocation8 + $0x18] sm:$0xff]  }
 0x14f   :  { %v2916_v56 = vpop.f32.mrf.mxu0  ;;  %v4064_v58 = vpop.f32.mrf.mxu1 }
 0x150   :  { %v558_v57 = vpack.c.bf16 %v543_v52, %v542_v51  ;;  %v548_v18 = vmul.f32 %v2916_v56, %v4040_v37  ;;  %v4261_v37 = vld [vmem:[%s4534_s11] ss:$0 sm:$0xff] }
 0x151   :  { %v415_v62 = vpop.f32.mrf.mxu0  ;;  %v4068_v1 = vpop.f32.mrf.mxu1 }
 0x152   :  { %2974 = vmatprep.mubr.bf16.mxu0 %v558_v57  ;;  %v546_v10 = vmul.f32 %v4036_v35, %v415_v62  ;;  %v4101_v62 = vpop.permute.xlu1 %1145 }
 0x153   :  { %v2917_v2 = vpop.f32.mrf.mxu0  ;;  %2975 = vmatmul.mubr.bf16.vlgmr.msra.gmra.mxu0 %v559_v60  ;;  %v4070_v3 = vpop.f32.mrf.mxu1 }
 0x154   :  { %3023 = vmatpush3.bf16.msra.mxu0 %v4020_v20  ;;  %v549_v6 = vmul.f32 %v2917_v2, %v4038_v36 }
 0x155   :  { %v418_v7 = vpop.f32.mrf.mxu0  ;;  %3024 = vmatprep.subr.bf16.mxu0 %v3345_v63  ;;  %v4078_v14 = vpop.f32.mrf.mxu1 }
 0x156   :  { %v547_v12 = vmul.f32 %v4034_v34, %v418_v7  ;;  %v561_v22 = vpack.c.bf16 %v549_v6, %v548_v18  ;;  %v3353_v6 = vld [vmem:[#allocation8 + $0x10] sm:$0xff]  }
 0x157   :  { %v2920_v19 = vpop.f32.mrf.mxu0  ;;  %v4083_v20 = vpop.f32.mrf.mxu1 }
 0x158   :  { %v560_v21 = vpack.c.bf16 %v547_v12, %v546_v10  ;;  %3025 = vmatpush3.bf16.msra.mxu0 %v3345_v63  ;;  %v552_v55 = vmul.f32 %v2920_v19, %v4052_v45 }
 0x159   :  { %v431_v23 = vpop.f32.mrf.mxu0  ;;  %3026 = vmatprep.subr.bf16.mxu0 %v3347_v9  ;;  %v4085_v25 = vpop.f32.mrf.mxu1 }
 0x15a   :  { %2978 = vmatprep.mubr.bf16.mxu0 %v560_v21  ;;  %v550_v50 = vmul.f32 %v4044_v39, %v431_v23  ;;  %v3355_v21 = vld [vmem:[#allocation8 + $0x8] sm:$0xff]  }
 0x15b   :  { %v2921_v27 = vpop.f32.mrf.mxu0  ;;  %2979 = vmatmul.mubr.bf16.gmra.mxu0 %v561_v22  ;;  %v4089_v28 = vpop.f32.mrf.mxu1 }
 0x15c   :  { %3027 = vmatpush3.bf16.msra.mxu0 %v3347_v9  ;;  %v553_v43 = vmul.f32 %v2921_v27, %v4048_v42  ;;  %v4105_v9 = vpop.permute.xlu0 %1140  ;;  %v4114_v27 = vpop.permute.xlu1 %1155 }
 0x15d   :  { %v434_v46 = vpop.f32.mrf.mxu0  ;;  %3028 = vmatprep.subr.bf16.mxu0 %v3349_v24  ;;  %v4096_v52 = vpop.f32.mrf.mxu1 }
 0x15e   :  { %v551_v51 = vmul.f32 %v4042_v38, %v434_v46  ;;  %v563_v63 = vpack.c.bf16 %v553_v43, %v552_v55  ;;  %v3357_v55 = vld [vmem:[#allocation8] sm:$0xff]  }
 0x15f   :  { %v2924_v56 = vpop.f32.mrf.mxu0  ;;  %v4099_v60 = vpop.f32.mrf.mxu1 }
 0x160   :  { %v562_v57 = vpack.c.bf16 %v551_v51, %v550_v50  ;;  %3029 = vmatpush3.bf16.msra.mxu0 %v3349_v24  ;;  %v556_v43 = vmul.f32 %v2924_v56, %v4080_v16  ;;  %v4117_v51 = vpop.permute.xlu0 %1150 }
 0x161   :  { %v447_v2 = vpop.f32.mrf.mxu0  ;;  %3030 = vmatprep.subr.bf16.mxu0 %v3351_v48  ;;  %v4103_v7 = vpop.f32.mrf.mxu1 }
 0x162   :  { %2982 = vmatprep.mubr.bf16.mxu0 %v562_v57  ;;  %v554_v22 = vmul.f32 %v4066_v59, %v447_v2  ;;  %v4120_v2 = vpop.permute.xlu1 %1165 }
 0x163   :  { %v2925_v10 = vpop.f32.mrf.mxu0  ;;  %2983 = vmatmul.mubr.bf16.gmra.mxu0 %v563_v63  ;;  %v4107_v12 = vpop.f32.mrf.mxu1 }
 0x164   :  { %3031 = vmatpush3.bf16.msra.mxu0 %v3351_v48  ;;  %v557_v18 = vmul.f32 %v2925_v10, %v4073_v4 }
 0x165   :  { %v450_v19 = vpop.f32.mrf.mxu0  ;;  %3032 = vmatprep.subr.bf16.mxu0 %v3353_v6  ;;  %v4112_v24 = vpop.f32.mrf.mxu1 }
 0x166   :  { %v555_v23 = vmul.f32 %v4061_v54, %v450_v19  ;;  %v565_v48 = vpack.c.bf16 %v557_v18, %v556_v43  ;;  %v4123_v19 = vpop.permute.xlu0 %1160 }
 0x167   :  { %v3008_v50 = vpop.f32.mrf.mxu1 }
 0x168   :  { %v564_v46 = vpack.c.bf16 %v555_v23, %v554_v22  ;;  %3033 = vmatpush3.bf16.msra.mxu0 %v3353_v6  ;;  %v1210_v22 = vmul.f32 %v3008_v50, %v4105_v9 }
 0x169   :  { %3034 = vmatprep.subr.bf16.mxu0 %v3355_v21  ;;  %v1065_v57 = vpop.f32.mrf.mxu1 }
 0x16a   :  { %2986 = vmatprep.mubr.bf16.mxu0 %v564_v46  ;;  %v1208_v6 = vmul.f32 %v4091_v40, %v1065_v57  ;;  %v4132_v57 = vpop.permute.xlu0 %1170 }
 0x16b   :  { %2987 = vmatmul.mubr.bf16.gmra.mxu0 %v565_v48  ;;  %v3009_v63 = vpop.f32.mrf.mxu1  ;;  %v4128_v48 = vpop.permute.xlu1 %1175 }
 0x16c   :  { %3035 = vmatpush3.bf16.msra.mxu0 %v3355_v21  ;;  %3038 = vmatprep.mubr.bf16.mxu0 %v3823_v17  ;;  %v1211_v56 = vmul.f32 %v3009_v63, %v4101_v62  ;;  %v3360_v17 = vld [vmem:[#allocation11 + $0x30] sm:$0xff]  }
 0x16d   :  { %3036 = vmatprep.subr.bf16.mxu0 %v3357_v55  ;;  %v1068_v10 = vpop.f32.mrf.mxu1 }
 0x16e   :  { %v1209_v18 = vmul.f32 %v4087_v26, %v1068_v10  ;;  %v1225_v21 = vpack.c.bf16 %v1211_v56, %v1210_v22  ;;  %v3361_v56 = vld [vmem:[#allocation11 + $0x28] sm:$0xff]   ;;  %v4141_v16 = vpop.permute.xlu0 %1180 }
 0x16f   :  { %v3012_v23 = vpop.f32.mrf.mxu1  ;;  %v4139_v22 = vpop.permute.xlu1 %1185 }
 0x170   :  { %3037 = vmatpush3.bf16.msra.mxu0 %v3357_v55  ;;  %v1224_v43 = vpack.c.bf16 %v1209_v18, %v1208_v6  ;;  %v1214_v18 = vmul.f32 %v3012_v23, %v4123_v19  ;;  %v3392_v23 = vld [vmem:[%s4527_s4 + $0x20] sm:$0xff]  }
 0x171   :  { %v1081_v46 = vpop.f32.mrf.mxu1 }
 0x172   :  { %3070 = vmatprep.mubr.bf16.mxu1 %v1224_v43  ;;  %v1212_v10 = vmul.f32 %v4117_v51, %v1081_v46  ;;  %v3391_v46 = vld [vmem:[%s4527_s4 + $0x18] sm:$0xff]  }
 0x173   :  { %3039 = vmatmul.mubr.bf16.vlgmr.msra.gmra.mxu0 %v3816_v15  ;;  %v3013_v63 = vpop.f32.mrf.mxu1  ;;  %3071 = vmatmul.mubr.bf16.vlgmr.msra.gmra.mxu1 %v1225_v21 }
 0x174   :  { %3042 = vmatprep.mubr.bf16.mxu0 %v3801_v11  ;;  %3119 = vmatpush3.bf16.msra.mxu1 %v4023_v29  ;;  %v1215_v50 = vmul.f32 %v3013_v63, %v4120_v2  ;;  %v3362_v29 = vld [vmem:[#allocation11 + $0x20] sm:$0xff]  }
 0x175   :  { %v1084_v55 = vpop.f32.mrf.mxu1  ;;  %3120 = vmatprep.subr.bf16.mxu1 %v3360_v17 }
 0x176   :  { %v1213_v6 = vmul.f32 %v4114_v27, %v1084_v55  ;;  %v1227_v11 = vpack.c.bf16 %v1215_v50, %v1214_v18  ;;  %v4150_v55 = vpop.permute.xlu1 %1195 }
 0x177   :  { %v3016_v15 = vpop.f32.mrf.mxu1 }
 0x178   :  { %v1226_v43 = vpack.c.bf16 %v1213_v6, %v1212_v10  ;;  %3121 = vmatpush3.bf16.msra.mxu1 %v3360_v17  ;;  %v1218_v18 = vmul.f32 %v3016_v15, %v4141_v16 }
 0x179   :  { %v1097_v21 = vpop.f32.mrf.mxu1  ;;  %3122 = vmatprep.subr.bf16.mxu1 %v3361_v56 }
 0x17a   :  { %3074 = vmatprep.mubr.bf16.mxu1 %v1226_v43  ;;  %v1216_v10 = vmul.f32 %v4132_v57, %v1097_v21  ;;  %v3394_v21 = vld [vmem:[%s4527_s4 + $0x30] sm:$0xff]   ;;  %v4163_v15 = vpop.permute.xlu1 %1205 }
 0x17b   :  { %3043 = vmatmul.mubr.bf16.gmra.mxu0 %v3391_v46  ;;  %v3017_v63 = vpop.f32.mrf.mxu1  ;;  %3075 = vmatmul.mubr.bf16.gmra.mxu1 %v1227_v11  ;;  %v4155_v11 = vpop.permute.xlu0 %1190 }
 0x17c   :  { %3046 = vmatprep.mubr.bf16.mxu0 %v3392_v23  ;;  %3123 = vmatpush3.bf16.msra.mxu1 %v3361_v56  ;;  %v1219_v17 = vmul.f32 %v3017_v63, %v4139_v22  ;;  %v3393_v56 = vld [vmem:[%s4527_s4 + $0x28] sm:$0xff]  }
 0x17d   :  { %v1100_v50 = vpop.f32.mrf.mxu1  ;;  %3124 = vmatprep.subr.bf16.mxu1 %v3362_v29 }
 0x17e   :  { %v1217_v6 = vmul.f32 %v4128_v48, %v1100_v50  ;;  %v1229_v54 = vpack.c.bf16 %v1219_v17, %v1218_v18 }
 0x17f   :  { %v3020_v43 = vpop.f32.mrf.mxu1  ;;  %v4166_v17 = vpop.permute.xlu0 %1200 }
 0x180   :  { %v1228_v46 = vpack.c.bf16 %v1217_v6, %v1216_v10  ;;  %3125 = vmatpush3.bf16.msra.mxu1 %v3362_v29  ;;  %v1222_v18 = vmul.f32 %v3020_v43, %v4166_v17  ;;  %v3365_v43 = vld [vmem:[#allocation11 + $0x8] sm:$0xff]  }
 0x181   :  { %v1113_v23 = vpop.f32.mrf.mxu1 }
 0x182   :  { %3078 = vmatprep.mubr.bf16.mxu1 %v1228_v46  ;;  %v1220_v10 = vmul.f32 %v4155_v11, %v1113_v23  ;;  %v3364_v23 = vld [vmem:[#allocation11 + $0x10] sm:$0xff]  }
 0x183   :  { %3047 = vmatmul.mubr.bf16.gmra.mxu0 %v3393_v56  ;;  %v3021_v63 = vpop.f32.mrf.mxu1  ;;  %3079 = vmatmul.mubr.bf16.gmra.mxu1 %v1229_v54  ;;  %v3395_v56 = vld [vmem:[%s4527_s4 + $0x38] sm:$0xff]  }
 0x184   :  { %3050 = vmatprep.mubr.bf16.mxu0 %v3394_v21  ;;  %v1223_v50 = vmul.f32 %v3021_v63, %v4163_v15  ;;  %v3396_v63 = vld [vmem:[%s4566_s7] sm:$0xff]   ;;  %v3363_v21 = vld [vmem:[#allocation11 + $0x18] sm:$0xff]  }
 0x185   :  { %v1116_v29 = vpop.f32.mrf.mxu1  ;;  %3126 = vmatprep.subr.bf16.mxu1 %v3363_v21 }
 0x186   :  { %v1221_v6 = vmul.f32 %v4150_v55, %v1116_v29  ;;  %v1231_v54 = vpack.c.bf16 %v1223_v50, %v1222_v18  ;;  %3127 = vmatpush3.bf16.msra.mxu1 %v3363_v21  ;;  %v3366_v50 = vld [vmem:[#allocation11] sm:$0xff]  }
 0x187   :  { %3128 = vmatprep.subr.bf16.mxu1 %v3364_v23 }
 0x188   :  { %v1230_v46 = vpack.c.bf16 %v1221_v6, %v1220_v10 }
 0x18a   :  { %3082 = vmatprep.mubr.bf16.mxu1 %v1230_v46  ;;  %3129 = vmatpush3.bf16.msra.mxu1 %v3364_v23 }
 0x18b   :  { %3051 = vmatmul.mubr.bf16.gmra.mxu0 %v3395_v56  ;;  %3083 = vmatmul.mubr.bf16.gmra.mxu1 %v1231_v54  ;;  %v4182_v54 = vld [vmem:[%s4531_s8] ss:$0 sm:$0xff] }
 0x18c   :  { %3102 = vmatprep.mubr.bf16.mxu0 %v3396_v63  ;;  %3130 = vmatprep.subr.bf16.mxu1 %v3365_v43 }
 0x18e   :  { %3131 = vmatpush3.bf16.msra.mxu1 %v3365_v43 }
 0x18f   :  { %3132 = vmatprep.subr.bf16.mxu1 %v3366_v50 }
 0x192   :  { %3133 = vmatpush3.bf16.msra.mxu1 %v3366_v50 }
 0x213   :  { %v2976_v29 = vpop.f32.mrf.mxu0 }
 0x214   :  { %v882_v18 = vadd.f32 %v2976_v29, %v4046_v41 }
 0x215   :  { %v873_v10 = vpop.f32.mrf.mxu0 }
 0x216   :  { %v874_v6 = vadd.f32 %v873_v10, %v4050_v44  ;;  %v945_v50 = vadd.f32 %v4182_v54, %v882_v18 }
 0x217   :  { %v2977_v46 = vpop.f32.mrf.mxu0 }
 0x218   :  { %v885_v56 = vadd.f32 %v2977_v46, %v4054_v47  ;;  %v943_v21 = vadd.f32 %v4182_v54, %v874_v6  ;;  %v961_v38 = vmax.f32 %v945_v50, 0.0 }
 0x219   :  { %v876_v63 = vpop.f32.mrf.mxu0 }
 0x21a   :  { %v946_v23 = vadd.f32 %v4182_v54, %v885_v56  ;;  %v877_v43 = vadd.f32 %v876_v63, %v4059_v53  ;;  %v959_v59 = vmax.f32 %v943_v21, 0.0 }
 0x21b   :  { %v2980_v44 = vpop.f32.mrf.mxu0 }
 0x21c   :  { %v944_v41 = vadd.f32 %v4182_v54, %v877_v43  ;;  %v962_v29 = vmax.f32 %v946_v23, 0.0  ;;  %v898_v47 = vadd.f32 %v2980_v44, %v4064_v58 }
 0x21d   :  { %v889_v10 = vpop.f32.mrf.mxu0 }
 0x21e   :  { %v960_v4 = vmax.f32 %v944_v41, 0.0  ;;  %v890_v45 = vadd.f32 %v889_v10, %v4068_v1  ;;  %v4195_v53 = vpack.c.bf16 %v962_v29, %v961_v38  ;;  %v949_v1 = vadd.f32 %v4182_v54, %v898_v47 }
 0x21f   :  { %v2981_v46 = vpop.f32.mrf.mxu0 }
 0x220   :  { %v901_v6 = vadd.f32 %v2981_v46, %v4070_v3  ;;  %v4193_v56 = vpack.c.bf16 %v960_v4, %v959_v59  ;;  %v947_v63 = vadd.f32 %v4182_v54, %v890_v45  ;;  %v965_v45 = vmax.f32 %v949_v1, 0.0 }
 0x221   :  { %v892_v18 = vpop.f32.mrf.mxu0 }
 0x222   :  { %v950_v23 = vadd.f32 %v4182_v54, %v901_v6  ;;  %v893_v21 = vadd.f32 %v892_v18, %v4078_v14  ;;  %3134 = vmatprep.mubr.bf16.mxu1 %v4193_v56  ;;  %v963_v38 = vmax.f32 %v947_v63, 0.0 }
 0x223   :  { %v2984_v43 = vpop.f32.mrf.mxu0  ;;  %3135 = vmatmul.mubr.bf16.vlgmr.msra.gmra.mxu1 %v4195_v53 }
 0x224   :  { %v948_v58 = vadd.f32 %v4182_v54, %v893_v21  ;;  %v966_v59 = vmax.f32 %v950_v23, 0.0  ;;  %v914_v44 = vadd.f32 %v2984_v43, %v4083_v20 }
 0x225   :  { %v905_v3 = vpop.f32.mrf.mxu0 }
 0x226   :  { %v964_v4 = vmax.f32 %v948_v58, 0.0  ;;  %v906_v50 = vadd.f32 %v905_v3, %v4085_v25  ;;  %v4209_v47 = vpack.c.bf16 %v966_v59, %v965_v45  ;;  %v953_v25 = vadd.f32 %v4182_v54, %v914_v44 }
 0x227   :  { %v2985_v41 = vpop.f32.mrf.mxu0 }
 0x228   :  { %v917_v14 = vadd.f32 %v2985_v41, %v4089_v28  ;;  %v4207_v29 = vpack.c.bf16 %v964_v4, %v963_v38  ;;  %v951_v46 = vadd.f32 %v4182_v54, %v906_v50  ;;  %v969_v59 = vmax.f32 %v953_v25, 0.0 }
 0x229   :  { %v908_v10 = vpop.f32.mrf.mxu0 }
 0x22a   :  { %v954_v6 = vadd.f32 %v4182_v54, %v917_v14  ;;  %v909_v18 = vadd.f32 %v908_v10, %v4096_v52  ;;  %3138 = vmatprep.mubr.bf16.mxu1 %v4207_v29  ;;  %v967_v1 = vmax.f32 %v951_v46, 0.0 }
 0x22b   :  { %v2988_v63 = vpop.f32.mrf.mxu0  ;;  %3139 = vmatmul.mubr.bf16.gmra.mxu1 %v4209_v47 }
 0x22c   :  { %v952_v20 = vadd.f32 %v4182_v54, %v909_v18  ;;  %v930_v28 = vadd.f32 %v2988_v63, %v4099_v60  ;;  %v970_v23 = vmax.f32 %v954_v6, 0.0 }
 0x22d   :  { %v921_v21 = vpop.f32.mrf.mxu0 }
 0x22e   :  { %v968_v43 = vmax.f32 %v952_v20, 0.0  ;;  %v922_v58 = vadd.f32 %v921_v21, %v4103_v7  ;;  %v957_v52 = vadd.f32 %v4182_v54, %v930_v28  ;;  %v980_v45 = vpack.c.bf16 %v970_v23, %v969_v59 }
 0x22f   :  { %v2989_v3 = vpop.f32.mrf.mxu0 }
 0x230   :  { %v933_v38 = vadd.f32 %v2989_v3, %v4107_v12  ;;  %v979_v4 = vpack.c.bf16 %v968_v43, %v967_v1  ;;  %v955_v44 = vadd.f32 %v4182_v54, %v922_v58  ;;  %v973_v7 = vmax.f32 %v957_v52, 0.0 }
 0x231   :  { %v924_v50 = vpop.f32.mrf.mxu0 }
 0x232   :  { %v958_v41 = vadd.f32 %v4182_v54, %v933_v38  ;;  %v925_v60 = vadd.f32 %v924_v50, %v4112_v24  ;;  %3142 = vmatprep.mubr.bf16.mxu1 %v979_v4  ;;  %v971_v18 = vmax.f32 %v955_v44, 0.0 }
 0x233   :  { %v4225_v14 = vpop.f32.mrf.mxu0  ;;  %3143 = vmatmul.mubr.bf16.gmra.mxu1 %v980_v45  ;;  %v4228_v6 = vpop.f32.mrf.mxu1 }
 0x234   :  { %v974_v10 = vmax.f32 %v958_v41, 0.0  ;;  %v956_v46 = vadd.f32 %v4182_v54, %v925_v60 }
 0x235   :  { %v4230_v12 = vpop.f32.mrf.mxu0  ;;  %v4232_v63 = vpop.f32.mrf.mxu1 }
 0x236   :  { %v972_v25 = vmax.f32 %v956_v46, 0.0  ;;  %v982_v20 = vpack.c.bf16 %v974_v10, %v973_v7 }
 0x237   :  { %v4234_v28 = vpop.f32.mrf.mxu0  ;;  %v4236_v24 = vpop.f32.mrf.mxu1 }
 0x238   :  { %3182 = vmatprep.subr.bf16.mxu1 %v982_v20  ;;  %v981_v23 = vpack.c.bf16 %v972_v25, %v971_v18 }
 0x239   :  { %v4238_v21 = vpop.f32.mrf.mxu0  ;;  %3183 = vmatpush3.bf16.msra.mxu1 %v982_v20  ;;  %v4240_v1 = vpop.f32.mrf.mxu1 }
 0x23a   :  { %3146 = vmatprep.mubr.bf16.mxu1 %v981_v23  ;;  %3184 = vmatprep.subr.bf16.mxu1 %v981_v23 }
 0x23b   :  { %v4242_v54 = vpop.f32.mrf.mxu0  ;;  %3147 = vmatmul.mubr.bf16.gmra.mxu1 %v982_v20  ;;  %v4244_v43 = vpop.f32.mrf.mxu1 }
 0x23c   :  { %3198 = vmatprep.mubr.bf16.mxu1 %v3928_v49 }
 0x23d   :  { %v4247_v58 = vpop.f32.mrf.mxu0  ;;  %3185 = vmatpush3.bf16.msra.mxu1 %v981_v23  ;;  %v4249_v59 = vpop.f32.mrf.mxu1 }
 0x23e   :  { %3186 = vmatprep.subr.bf16.mxu1 %v980_v45 }
 0x23f   :  { %v3045_v3 = vpop.f32.mrf.mxu0  ;;  %v3077_v52 = vpop.f32.mrf.mxu1 }
 0x241   :  { %v4251_v38 = vpop.f32.mrf.mxu0  ;;  %3187 = vmatpush3.bf16.msra.mxu1 %v980_v45  ;;  %v1510_v50 = vpop.f32.mrf.mxu1 }
 0x242   :  { %3188 = vmatprep.subr.bf16.mxu1 %v979_v4 }
 0x243   :  { %v3048_v44 = vpop.f32.mrf.mxu0  ;;  %v3080_v41 = vpop.f32.mrf.mxu1 }
 0x245   :  { %v1378_v60 = vpop.f32.mrf.mxu0  ;;  %3189 = vmatpush3.bf16.msra.mxu1 %v979_v4  ;;  %v1523_v7 = vpop.f32.mrf.mxu1 }
 0x246   :  { %3190 = vmatprep.subr.bf16.mxu1 %v4209_v47 }
 0x247   :  { %v3049_v49 = vpop.f32.mrf.mxu0  ;;  %v3081_v10 = vpop.f32.mrf.mxu1 }
 0x249   :  { %v1381_v46 = vpop.f32.mrf.mxu0  ;;  %3191 = vmatpush3.bf16.msra.mxu1 %v4209_v47  ;;  %v1526_v18 = vpop.f32.mrf.mxu1  ;;  %v1535_v47 = vadd.f32 %v3081_v10, %v3049_v49 }
 0x24a   :  { %3192 = vmatprep.subr.bf16.mxu1 %v4207_v29  ;;  %v1527_v31 = vadd.f32 %v1526_v18, %v1381_v46 }
 0x24b   :  { %v3052_v25 = vpop.f32.mrf.mxu0  ;;  %v3084_v20 = vpop.f32.mrf.mxu1  ;;  %v1572_v33 = vadd.f32 %v4261_v37, %v1535_v47 }
 0x24c   :  { %v1548_v45 = vadd.f32 %v3084_v20, %v3052_v25  ;;  %v1532_v25 = vadd.f32 %v3080_v41, %v3048_v44 }
 0x24d   :  { %v1394_v23 = vpop.f32.mrf.mxu0  ;;  %3193 = vmatpush3.bf16.msra.mxu1 %v4207_v29  ;;  %v1539_v39 = vpop.f32.mrf.mxu1  ;;  %v1588_v46 = vmax.f32 %v1572_v33, 0.0  ;;  %v1511_v33 = vadd.f32 %v1510_v50, %v4251_v38 }
 0x24e   :  { %3194 = vmatprep.subr.bf16.mxu1 %v4195_v53  ;;  %v1540_v4 = vadd.f32 %v1539_v39, %v1394_v23  ;;  %v1575_v35 = vadd.f32 %v4261_v37, %v1548_v45 }
 0x24f   :  { %v3053_v42 = vpop.f32.mrf.mxu0  ;;  %v3085_v34 = vpop.f32.mrf.mxu1  ;;  %v1566_v38 = vadd.f32 %v4261_v37, %v1511_v33  ;;  %v3376_v33 = vld [vmem:[#allocation10 + $0x30] sm:$0xff]  }
 0x250   :  { %v1551_v36 = vadd.f32 %v3085_v34, %v3053_v42  ;;  %v1573_v39 = vadd.f32 %v4261_v37, %v1540_v4  ;;  %v1591_v49 = vmax.f32 %v1575_v35, 0.0  ;;  %v1571_v34 = vadd.f32 %v4261_v37, %v1532_v25 }
 0x251   :  { %v1397_v30 = vpop.f32.mrf.mxu0  ;;  %3195 = vmatpush3.bf16.msra.mxu1 %v4195_v53  ;;  %v1542_v29 = vpop.f32.mrf.mxu1  ;;  %v1524_v42 = vadd.f32 %v1523_v7, %v1378_v60  ;;  %v1570_v35 = vadd.f32 %v4261_v37, %v1527_v31  ;;  %v1516_v60 = vadd.f32 %v4244_v43, %v4242_v54  ;;  %v1508_v25 = vadd.f32 %v4249_v59, %v4247_v58 }
 0x252   :  { %3196 = vmatprep.subr.bf16.mxu1 %v4193_v56  ;;  %v1576_v20 = vadd.f32 %v4261_v37, %v1551_v36  ;;  %v1543_v23 = vadd.f32 %v1542_v29, %v1397_v30  ;;  %v1589_v53 = vmax.f32 %v1573_v39, 0.0  ;;  %v3397_v30 = vld [vmem:[%s4568_s21 + $0x8] sm:$0xff]   ;;  %v1519_v36 = vadd.f32 %v3077_v52, %v3045_v3 }
 0x253   :  { %v1587_v7 = vmax.f32 %v1571_v34, 0.0  ;;  %v1569_v3 = vadd.f32 %v4261_v37, %v1524_v42  ;;  %v1586_v52 = vmax.f32 %v1570_v35, 0.0  ;;  %v1567_v47 = vadd.f32 %v4261_v37, %v1516_v60  ;;  %v3367_v34 = vld [vmem:[#allocation13 + $0x38] sm:$0xff]   ;;  %v3368_v42 = vld [vmem:[#allocation13 + $0x30] sm:$0xff]  }
 0x254   :  { %v1592_v10 = vmax.f32 %v1576_v20, 0.0  ;;  %v1574_v45 = vadd.f32 %v4261_v37, %v1543_v23  ;;  %v1568_v31 = vadd.f32 %v4261_v37, %v1519_v36  ;;  %v1503_v43 = vadd.f32 %v4236_v24, %v4234_v28  ;;  %v3370_v36 = vld [vmem:[#allocation13 + $0x20] sm:$0xff]   ;;  %v3371_v35 = vld [vmem:[#allocation13 + $0x18] sm:$0xff]   ;;  %v3372_v60 = vld [vmem:[#allocation13 + $0x10] sm:$0xff]  }
 0x255   :  { %3197 = vmatpush3.bf16.msra.mxu1 %v4193_v56  ;;  %v3398_v56 = vld [vmem:[%s4568_s21 + $0x10] sm:$0xff]   ;;  %v4291_v4 = vpack.c.bf16 %v1588_v46, %v1587_v7  ;;  %v1585_v54 = vmax.f32 %v1569_v3, 0.0  ;;  %v1500_v58 = vadd.f32 %v4228_v6, %v4225_v14  ;;  %v1583_v59 = vmax.f32 %v1567_v47, 0.0  ;;  %v3373_v7 = vld [vmem:[#allocation13 + $0x8] sm:$0xff]   ;;  %v3374_v3 = vld [vmem:[#allocation13] sm:$0xff]  }
 0x256   :  { %v1590_v44 = vmax.f32 %v1574_v45, 0.0  ;;  %v4272_v41 = vpack.c.bf16 %v1592_v10, %v1591_v49  ;;  %v1584_v29 = vmax.f32 %v1568_v31, 0.0  ;;  %v1565_v39 = vadd.f32 %v4261_v37, %v1508_v25  ;;  %3246 = vmatprep.subr.bf16.mxu1 %v3367_v34  ;;  %v3404_v46 = vld [vmem:[%s4566_s7 + $0x30] sm:$0xff]   ;;  %v3375_v31 = vld [vmem:[#allocation10 + $0x38] sm:$0xff]   ;;  %v3378_v47 = vld [vmem:[#allocation10 + $0x20] sm:$0xff]  }
 0x257   :  { %v4302_v50 = vpack.c.bf16 %v1586_v52, %v1585_v54  ;;  %v1495_v28 = vadd.f32 %v4240_v1, %v4238_v21  ;;  %v1582_v24 = vmax.f32 %v1566_v38, 0.0  ;;  %v1492_v14 = vadd.f32 %v4232_v63, %v4230_v12  ;;  %v3377_v52 = vld [vmem:[#allocation10 + $0x28] sm:$0xff]   ;;  %v3379_v25 = vld [vmem:[#allocation10 + $0x18] sm:$0xff]   ;;  %v3380_v54 = vld [vmem:[#allocation10 + $0x10] sm:$0xff]  }
 0x258   :  { %3199 = vmatmul.mubr.bf16.vlgmr.msra.gmra.mxu1 %v3397_v30  ;;  %3086 = vmatprep.subr.bf16.mxu0 %v4272_v41  ;;  %v4279_v18 = vpack.c.bf16 %v1590_v44, %v1589_v53  ;;  %v4313_v20 = vpack.c.bf16 %v1584_v29, %v1583_v59  ;;  %v1581_v6 = vmax.f32 %v1565_v39, 0.0  ;;  %v3402_v53 = vld [vmem:[%s4566_s7 + $0x20] sm:$0xff]   ;;  %v3369_v44 = vld [vmem:[#allocation13 + $0x28] sm:$0xff]   ;;  %v4359_v38 = vld [vmem:[#allocation14 + $0x38] sm:$0xff]  }
 0x259   :  { %3202 = vmatprep.mubr.bf16.mxu1 %v3398_v56  ;;  %3087 = vmatpush3.bf16.msra.mxu0 %v4272_v41  ;;  %v1562_v49 = vadd.f32 %v4261_v37, %v1495_v28  ;;  %v1561_v1 = vadd.f32 %v4261_v37, %v1492_v14  ;;  %v3403_v30 = vld [vmem:[%s4566_s7 + $0x28] sm:$0xff]   ;;  %v3405_v56 = vld [vmem:[%s4566_s7 + $0x38] sm:$0xff]   ;;  %v3382_v29 = vld [vmem:[#allocation10] sm:$0xff]  }
 0x25a   :  { %3088 = vmatprep.subr.bf16.mxu0 %v4279_v18  ;;  %v4322_v10 = vpack.c.bf16 %v1582_v24, %v1581_v6  ;;  %3247 = vmatpush3.bf16.msra.mxu1 %v3367_v34 }
 0x25b   :  { %v1578_v12 = vmax.f32 %v1562_v49, 0.0  ;;  %3248 = vmatprep.subr.bf16.mxu1 %v3368_v42 }
 0x25d   :  { %3089 = vmatpush3.bf16.msra.mxu0 %v4279_v18 }
 0x25e   :  { %3090 = vmatprep.subr.bf16.mxu0 %v4291_v4  ;;  %3249 = vmatpush3.bf16.msra.mxu1 %v3368_v42 }
 0x25f   :  { %3250 = vmatprep.subr.bf16.mxu1 %v3369_v44 }
 0x260   :  { %3203 = vmatmul.mubr.bf16.gmra.mxu1 %v3966_v61  ;;  %v1564_v61 = vadd.f32 %v4261_v37, %v1503_v43  ;;  %v3381_v43 = vld [vmem:[#allocation10 + $0x8] sm:$0xff]  }
 0x261   :  { %3206 = vmatprep.mubr.bf16.mxu1 %v3974_v0  ;;  %3091 = vmatpush3.bf16.msra.mxu0 %v4291_v4  ;;  %v1563_v0 = vadd.f32 %v4261_v37, %v1500_v58  ;;  %v3400_v37 = vld [vmem:[%s4566_s7 + $0x10] sm:$0xff]  }
 0x262   :  { %3092 = vmatprep.subr.bf16.mxu0 %v4302_v50  ;;  %v1580_v23 = vmax.f32 %v1564_v61, 0.0  ;;  %3251 = vmatpush3.bf16.msra.mxu1 %v3369_v44 }
 0x263   :  { %v1579_v21 = vmax.f32 %v1563_v0, 0.0  ;;  %3252 = vmatprep.subr.bf16.mxu1 %v3370_v36 }
 0x265   :  { %3093 = vmatpush3.bf16.msra.mxu0 %v4302_v50  ;;  %v4328_v63 = vpack.c.bf16 %v1580_v23, %v1579_v21 }
 0x266   :  { %3094 = vmatprep.subr.bf16.mxu0 %v4313_v20  ;;  %3253 = vmatpush3.bf16.msra.mxu1 %v3370_v36 }
 0x267   :  { %3254 = vmatprep.subr.bf16.mxu1 %v3371_v35 }
 0x268   :  { %3207 = vmatmul.mubr.bf16.gmra.mxu1 %v3990_v5  ;;  %v1577_v5 = vmax.f32 %v1561_v1, 0.0 }
 0x269   :  { %3210 = vmatprep.mubr.bf16.mxu1 %v3998_v8  ;;  %3095 = vmatpush3.bf16.msra.mxu0 %v4313_v20  ;;  %v3399_v8 = vld [vmem:[%s4566_s7 + $0x8] sm:$0xff]  }
 0x26a   :  { %3096 = vmatprep.subr.bf16.mxu0 %v4322_v10  ;;  %v4333_v45 = vpack.c.bf16 %v1578_v12, %v1577_v5  ;;  %3255 = vmatpush3.bf16.msra.mxu1 %v3371_v35 }
 0x26b   :  { %3256 = vmatprep.subr.bf16.mxu1 %v3372_v60 }
 0x26d   :  { %3097 = vmatpush3.bf16.msra.mxu0 %v4322_v10 }
 0x26e   :  { %3098 = vmatprep.subr.bf16.mxu0 %v4328_v63  ;;  %3257 = vmatpush3.bf16.msra.mxu1 %v3372_v60 }
 0x26f   :  { %3258 = vmatprep.subr.bf16.mxu1 %v3373_v7 }
 0x270   :  { %3211 = vmatmul.mubr.bf16.gmra.mxu1 %v4014_v13  ;;  %v3401_v13 = vld [vmem:[%s4566_s7 + $0x18] sm:$0xff]  }
 0x271   :  { %3099 = vmatpush3.bf16.msra.mxu0 %v4328_v63 }
 0x272   :  { %3100 = vmatprep.subr.bf16.mxu0 %v4333_v45  ;;  %3259 = vmatpush3.bf16.msra.mxu1 %v3373_v7 }
 0x273   :  { %3260 = vmatprep.subr.bf16.mxu1 %v3374_v3 }
 0x275   :  { %3101 = vmatpush3.bf16.msra.mxu0 %v4333_v45 }
 0x276   :  { %3261 = vmatpush3.bf16.msra.mxu1 %v3374_v3  ;;  %3150 = vmatprep.subr.bf16.mxu0 %v3375_v31 }
 0x278   :  { %3103 = vmatmul.mubr.bf16.vlgmr.msra.gmra.mxu0 %v3399_v8 }
 0x279   :  { %3106 = vmatprep.mubr.bf16.mxu0 %v3400_v37  ;;  %3151 = vmatpush3.bf16.msra.mxu0 %v3375_v31 }
 0x27a   :  { %3152 = vmatprep.subr.bf16.mxu0 %v3376_v33 }
 0x27d   :  { %3153 = vmatpush3.bf16.msra.mxu0 %v3376_v33 }
 0x27e   :  { %3154 = vmatprep.subr.bf16.mxu0 %v3377_v52 }
 0x280   :  { %3107 = vmatmul.mubr.bf16.gmra.mxu0 %v3401_v13 }
 0x281   :  { %3110 = vmatprep.mubr.bf16.mxu0 %v3402_v53  ;;  %3155 = vmatpush3.bf16.msra.mxu0 %v3377_v52 }
 0x282   :  { %3156 = vmatprep.subr.bf16.mxu0 %v3378_v47 }
 0x285   :  { %3157 = vmatpush3.bf16.msra.mxu0 %v3378_v47 }
 0x286   :  { %3158 = vmatprep.subr.bf16.mxu0 %v3379_v25 }
 0x288   :  { %3111 = vmatmul.mubr.bf16.gmra.mxu0 %v3403_v30 }
 0x289   :  { %3114 = vmatprep.mubr.bf16.mxu0 %v3404_v46  ;;  %3159 = vmatpush3.bf16.msra.mxu0 %v3379_v25 }
 0x28a   :  { %3160 = vmatprep.subr.bf16.mxu0 %v3380_v54 }
 0x28d   :  { %3161 = vmatpush3.bf16.msra.mxu0 %v3380_v54 }
 0x28e   :  { %3162 = vmatprep.subr.bf16.mxu0 %v3381_v43 }
 0x290   :  { %3115 = vmatmul.mubr.bf16.gmra.mxu0 %v3405_v56 }
 0x291   :  { %3163 = vmatpush3.bf16.msra.mxu0 %v3381_v43 }
 0x292   :  { %3164 = vmatprep.subr.bf16.mxu0 %v3382_v29 }
 0x295   :  { %3165 = vmatpush3.bf16.msra.mxu0 %v3382_v29 }
 0x296   :  { %3214 = vmatprep.subr.bf16.mxu0 %v4359_v38 }
 0x2e3   :  { %v4362_v58 = vpop.f32.mrf.mxu1 }
 0x2e5   :  { %v4364_v59 = vpop.f32.mrf.mxu1 }
 0x2e7   :  { %v4366_v39 = vpop.f32.mrf.mxu1 }
 0x2e9   :  { %v4368_v61 = vpop.f32.mrf.mxu1 }
 0x2eb   :  { %v4370_v28 = vpop.f32.mrf.mxu1 }
 0x2ed   :  { %v4372_v24 = vpop.f32.mrf.mxu1 }
 0x2ef   :  { %v4374_v0 = vpop.f32.mrf.mxu1 }
 0x2f1   :  { %v4376_v14 = vpop.f32.mrf.mxu1 }
 0x2f3   :  { %v4378_v6 = vpop.f32.mrf.mxu1 }
 0x2f5   :  { %v4380_v23 = vpop.f32.mrf.mxu1 }
 0x2f7   :  { %v4382_v49 = vpop.f32.mrf.mxu1 }
 0x2f9   :  { %v4384_v21 = vpop.f32.mrf.mxu1 }
 0x2fb   :  { %v4386_v1 = vpop.f32.mrf.mxu1 }
 0x2fd   :  { %v4388_v12 = vpop.f32.mrf.mxu1 }
 0x2ff   :  { %v4390_v5 = vpop.f32.mrf.mxu1 }
 0x301   :  { %v4392_v8 = vpop.f32.mrf.mxu1 }
 0x318   :  { %v3200_v37 = vpop.f32.mrf.mxu1 }
 0x319   :  { %v2182_v36 = vmul.f32 %v3200_v37, %v4105_v9 }
 0x31a   :  { %v2117_v13 = vpop.f32.mrf.mxu1 }
 0x31b   :  { %v2180_v44 = vmul.f32 %v2117_v13, %v4091_v40 }
 0x31c   :  { %v3201_v34 = vpop.f32.mrf.mxu1 }
 0x31d   :  { %v2183_v42 = vmul.f32 %v3201_v34, %v4101_v62 }
 0x31e   :  { %v2120_v53 = vpop.f32.mrf.mxu1 }
 0x31f   :  { %v2181_v30 = vmul.f32 %v2120_v53, %v4087_v26  ;;  %v2197_v56 = vpack.c.bf16 %v2183_v42, %v2182_v36 }
 0x320   :  { %v3204_v46 = vpop.f32.mrf.mxu1 }
 0x321   :  { %v2196_v35 = vpack.c.bf16 %v2181_v30, %v2180_v44  ;;  %v2186_v40 = vmul.f32 %v3204_v46, %v4123_v19 }
 0x322   :  { %v2133_v60 = vpop.f32.mrf.mxu1 }
 0x323   :  { %3262 = vmatprep.mubr.bf16.mxu1 %v2196_v35  ;;  %v2184_v33 = vmul.f32 %v2133_v60, %v4117_v51  ;;  %v4585_v60 = vld [vmem:[#allocation27_spill] sm:$0xff] }
 0x324   :  { %v3205_v7 = vpop.f32.mrf.mxu1  ;;  %3263 = vmatmul.mubr.bf16.vlgmr.msra.gmra.mxu1 %v2197_v56 }
 0x325   :  { %v2187_v3 = vmul.f32 %v3205_v7, %v4120_v2 }
 0x326   :  { %v2136_v31 = vpop.f32.mrf.mxu1 }
 0x327   :  { %v2185_v62 = vmul.f32 %v2136_v31, %v4114_v27  ;;  %v2199_v47 = vpack.c.bf16 %v2187_v3, %v2186_v40  ;;  %v4587_v31 = vld [vmem:[#allocation26_spill] sm:$0xff]  ;;  %v3384_v40 = vld [vmem:[#allocation14 + $0x30] sm:$0xff]  }
 0x328   :  { %v3208_v52 = vpop.f32.mrf.mxu1 }
 0x329   :  { %v2198_v26 = vpack.c.bf16 %v2185_v62, %v2184_v33  ;;  %v2190_v51 = vmul.f32 %v3208_v52, %v4141_v16 }
 0x32a   :  { %v2149_v9 = vpop.f32.mrf.mxu1 }
 0x32b   :  { %3266 = vmatprep.mubr.bf16.mxu1 %v2198_v26  ;;  %v2188_v29 = vmul.f32 %v2149_v9, %v4132_v57  ;;  %v4588_v26 = vld [vmem:[#allocation31_spill] sm:$0xff] }
 0x32c   :  { %v3209_v25 = vpop.f32.mrf.mxu1  ;;  %3267 = vmatmul.mubr.bf16.gmra.mxu1 %v2199_v47  ;;  %v3385_v9 = vld [vmem:[#allocation14 + $0x28] sm:$0xff]  }
 0x32d   :  { %v2191_v54 = vmul.f32 %v3209_v25, %v4139_v22  ;;  %v4589_v25 = vld [vmem:[#allocation30_spill] sm:$0xff] }
 0x32e   :  { %v2152_v43 = vpop.f32.mrf.mxu1 }
 0x32f   :  { %v2189_v2 = vmul.f32 %v2152_v43, %v4128_v48  ;;  %v2201_v13 = vpack.c.bf16 %v2191_v54, %v2190_v51  ;;  %v4590_v43 = vld [vmem:[#allocation29_spill] sm:$0xff] }
 0x330   :  { %v3212_v37 = vpop.f32.mrf.mxu1 }
 0x331   :  { %v2200_v27 = vpack.c.bf16 %v2189_v2, %v2188_v29  ;;  %v2194_v57 = vmul.f32 %v3212_v37, %v4166_v17  ;;  %v4591_v2 = vld [vmem:[#allocation32_spill] sm:$0xff] }
 0x332   :  { %v2165_v19 = vpop.f32.mrf.mxu1 }
 0x333   :  { %3270 = vmatprep.mubr.bf16.mxu1 %v2200_v27  ;;  %v2192_v44 = vmul.f32 %v2165_v19, %v4155_v11 }
 0x334   :  { %v3213_v34 = vpop.f32.mrf.mxu1  ;;  %3271 = vmatmul.mubr.bf16.gmra.mxu1 %v2201_v13 }
 0x335   :  { %v2195_v42 = vmul.f32 %v3213_v34, %v4163_v15  ;;  %v4586_v15 = vld [vmem:[#allocation28_spill] sm:$0xff]  ;;  %v3386_v34 = vld [vmem:[#allocation14 + $0x20] sm:$0xff]  }
 0x336   :  { %v2168_v53 = vpop.f32.mrf.mxu1 }
 0x337   :  { %v2193_v22 = vmul.f32 %v2168_v53, %v4150_v55  ;;  %v2203_v36 = vpack.c.bf16 %v2195_v42, %v2194_v57  ;;  %v4592_v42 = vld [vmem:[#allocation35_spill] sm:$0xff]  ;;  %v4593_v57 = vld [vmem:[#allocation34_spill] sm:$0xff] }
 0x338   :  { %v3104_v48 = vpop.f32.mrf.mxu0 }
 0x339   :  { %v2202_v30 = vpack.c.bf16 %v2193_v22, %v2192_v44  ;;  %v1700_v11 = vmul.f32 %v3104_v48, %v4587_v31  ;;  %v3387_v22 = vld [vmem:[#allocation14 + $0x18] sm:$0xff]   ;;  %v4596_v31 = vld [vmem:[#allocation39_spill] sm:$0xff] }
 0x33a   :  { %v1635_v16 = vpop.f32.mrf.mxu0  ;;  %v4594_v48 = vld [vmem:[#allocation33_spill] sm:$0xff] }
 0x33b   :  { %3274 = vmatprep.mubr.bf16.mxu1 %v2202_v30  ;;  %v1698_v7 = vmul.f32 %v1635_v16, %v4585_v60  ;;  %v4595_v16 = vld [vmem:[#allocation36_spill] sm:$0xff] }
 0x33c   :  { %3275 = vmatmul.mubr.bf16.gmra.mxu1 %v2203_v36  ;;  %v3105_v46 = vpop.f32.mrf.mxu0 }
 0x33d   :  { %v1701_v35 = vmul.f32 %v3105_v46, %v4030_v32 }
 0x33e   :  { %v1638_v56 = vpop.f32.mrf.mxu0 }
 0x33f   :  { %v1699_v3 = vmul.f32 %v1638_v56, %v4586_v15  ;;  %v1715_v62 = vpack.c.bf16 %v1701_v35, %v1700_v11  ;;  %v3388_v15 = vld [vmem:[#allocation14 + $0x10] sm:$0xff]  }
 0x340   :  { %v3108_v33 = vpop.f32.mrf.mxu0 }
 0x341   :  { %v1714_v55 = vpack.c.bf16 %v1699_v3, %v1698_v7  ;;  %v1704_v51 = vmul.f32 %v3108_v33, %v4591_v2 }
 0x342   :  { %v1651_v17 = vpop.f32.mrf.mxu0 }
 0x343   :  { %3166 = vmatprep.mubr.bf16.mxu0 %v1714_v55  ;;  %v1702_v54 = vmul.f32 %v1651_v17, %v4589_v25  ;;  %v3389_v55 = vld [vmem:[#allocation14 + $0x8] sm:$0xff]   ;;  %v3390_v25 = vld [vmem:[#allocation14] sm:$0xff]  }
 0x344   :  { %v3109_v52 = vpop.f32.mrf.mxu0  ;;  %3167 = vmatmul.mubr.bf16.vlgmr.msra.gmra.mxu0 %v1715_v62  ;;  %v4597_v62 = vld [vmem:[#allocation38_spill] sm:$0xff] }
 0x345   :  { %3215 = vmatpush3.bf16.msra.mxu0 %v4359_v38  ;;  %v1705_v47 = vmul.f32 %v3109_v52, %v4588_v26  ;;  %v4599_v26 = vld [vmem:[#allocation40_spill] sm:$0xff] }
 0x346   :  { %v1654_v32 = vpop.f32.mrf.mxu0  ;;  %3216 = vmatprep.subr.bf16.mxu0 %v3384_v40 }
 0x347   :  { %v1703_v29 = vmul.f32 %v1654_v32, %v4590_v43  ;;  %v1717_v13 = vpack.c.bf16 %v1705_v47, %v1704_v51 }
 0x348   :  { %v3112_v37 = vpop.f32.mrf.mxu0 }
 0x349   :  { %v1716_v27 = vpack.c.bf16 %v1703_v29, %v1702_v54  ;;  %3217 = vmatpush3.bf16.msra.mxu0 %v3384_v40  ;;  %v1708_v46 = vmul.f32 %v3112_v37, %v4595_v16  ;;  %v4598_v40 = vld [vmem:[#allocation37_spill] sm:$0xff] }
 0x34a   :  { %v1667_v19 = vpop.f32.mrf.mxu0  ;;  %3218 = vmatprep.subr.bf16.mxu0 %v3385_v9 }
 0x34b   :  { %3170 = vmatprep.mubr.bf16.mxu0 %v1716_v27  ;;  %v1706_v30 = vmul.f32 %v1667_v19, %v4593_v57 }
 0x34c   :  { %v3113_v38 = vpop.f32.mrf.mxu0  ;;  %3171 = vmatmul.mubr.bf16.gmra.mxu0 %v1717_v13 }
 0x34d   :  { %3219 = vmatpush3.bf16.msra.mxu0 %v3385_v9  ;;  %v1709_v53 = vmul.f32 %v3113_v38, %v4592_v42 }
 0x34e   :  { %v1670_v44 = vpop.f32.mrf.mxu0  ;;  %3220 = vmatprep.subr.bf16.mxu0 %v3386_v34 }
 0x34f   :  { %v1707_v36 = vmul.f32 %v1670_v44, %v4594_v48  ;;  %v1719_v60 = vpack.c.bf16 %v1709_v53, %v1708_v46 }
 0x350   :  { %v3116_v35 = vpop.f32.mrf.mxu0 }
 0x351   :  { %v1718_v56 = vpack.c.bf16 %v1707_v36, %v1706_v30  ;;  %3221 = vmatpush3.bf16.msra.mxu0 %v3386_v34  ;;  %v1712_v47 = vmul.f32 %v3116_v35, %v4599_v26 }
 0x352   :  { %v1683_v7 = vpop.f32.mrf.mxu0  ;;  %3222 = vmatprep.subr.bf16.mxu0 %v3387_v22 }
 0x353   :  { %3174 = vmatprep.mubr.bf16.mxu0 %v1718_v56  ;;  %v1710_v17 = vmul.f32 %v1683_v7, %v4597_v62 }
 0x354   :  { %v3117_v3 = vpop.f32.mrf.mxu0  ;;  %3175 = vmatmul.mubr.bf16.gmra.mxu0 %v1719_v60 }
 0x355   :  { %3223 = vmatpush3.bf16.msra.mxu0 %v3387_v22  ;;  %v1713_v11 = vmul.f32 %v3117_v3, %v4596_v31 }
 0x356   :  { %v1686_v33 = vpop.f32.mrf.mxu0  ;;  %3224 = vmatprep.subr.bf16.mxu0 %v3388_v15 }
 0x357   :  { %v1711_v52 = vmul.f32 %v1686_v33, %v4598_v40  ;;  %v1721_v9 = vpack.c.bf16 %v1713_v11, %v1712_v47 }
 0x359   :  { %v1720_v32 = vpack.c.bf16 %v1711_v52, %v1710_v17  ;;  %3225 = vmatpush3.bf16.msra.mxu0 %v3388_v15 }
 0x35a   :  { %3226 = vmatprep.subr.bf16.mxu0 %v3389_v55 }
 0x35b   :  { %3178 = vmatprep.mubr.bf16.mxu0 %v1720_v32 }
 0x35c   :  { %3179 = vmatmul.mubr.bf16.gmra.mxu0 %v1721_v9 }
 0x35d   :  { %3227 = vmatpush3.bf16.msra.mxu0 %v3389_v55  ;;  %3230 = vmatprep.mubr.bf16.mxu0 %v4333_v45  ;;  %v4438_v45 = vld [vmem:[%s4537_s14] ss:$0 sm:$0xff]  ;;  %s3631_s14 = smov [#allocation17]  }
 0x35e   :  { %3228 = vmatprep.subr.bf16.mxu0 %v3390_v25  ;;  %s2582_s27 = sshll.u32 %s3631_s14, 4  ;;  %s2583_s27 = int_to_ptr.vmem [resolvable:$true] %s2582_s27 }
 0x35f   :  { %s3566_s4 = scalar_lea.vmem %s2583_s27, 2048  ;;  %p3571_p13 = scmp.lt.s32.totalorder %s2583_s27, %s2583_s27 }
 0x360   :  { %p3567_p12 = scmp.ne.s32.totalorder %s2583_s27, %s3566_s4  ;;  %p3572_p0 = scmp.lt.s32.totalorder %s3566_s4, %s3566_s4 }
 0x361   :  { %3229 = vmatpush3.bf16.msra.mxu0 %v3390_v25 }
 0x362   :  { %p3573_p1 = por %p3572_p0, %p3571_p13 }
 0x364   :  { %3231 = vmatmul.mubr.bf16.vlgmr.msra.gmra.mxu0 %v4328_v63  ;;  %p3574_p2 = pnand %p3573_p1, %p3567_p12 }
 0x365   :  { %3234 = vmatprep.mubr.bf16.mxu0 %v4322_v10 }
 0x36c   :  { %3235 = vmatmul.mubr.bf16.gmra.mxu0 %v4313_v20 }
 0x36d   :  { %3238 = vmatprep.mubr.bf16.mxu0 %v4302_v50 }
 0x374   :  { %3239 = vmatmul.mubr.bf16.gmra.mxu0 %v4291_v4 }
 0x375   :  { %3242 = vmatprep.mubr.bf16.mxu0 %v4279_v18 }
 0x37c   :  { %3243 = vmatmul.mubr.bf16.gmra.mxu0 %v4272_v41 }
 0x3e4   :  { %v4441_v43 = vpop.f32.mrf.mxu1 }
 0x3e6   :  { %v4447_v29 = vpop.f32.mrf.mxu1 }
 0x3e8   :  { %v4453_v13 = vpop.f32.mrf.mxu1 }
 0x3ea   :  { %v4459_v53 = vpop.f32.mrf.mxu1 }
 0x3ec   :  { %v4465_v48 = vpop.f32.mrf.mxu1 }
 0x3ee   :  { %v4471_v56 = vpop.f32.mrf.mxu1 }
 0x3f0   :  { %v3269_v31 = vpop.f32.mrf.mxu1 }
 0x404   :  { %v3168_v54 = vpop.f32.mrf.mxu0 }
 0x405   :  { %v1990_v63 = vadd.f32 %v3168_v54, %v4362_v58 }
 0x406   :  { %v1981_v10 = vpop.f32.mrf.mxu0 }
 0x407   :  { %v2053_v20 = vadd.f32 %v4438_v45, %v1990_v63  ;;  %v1982_v50 = vadd.f32 %v1981_v10, %v4364_v59 }
 0x408   :  { %v3169_v4 = vpop.f32.mrf.mxu0 }
 0x409   :  { %2069 = vst [vmem:[#allocation17 + $0x10] sm:$0xff] %v2053_v20  ;;  %v2051_v18 = vadd.f32 %v4438_v45, %v1982_v50  ;;  %v1993_v41 = vadd.f32 %v3169_v4, %v4366_v39 }
 0x40a   :  { %v1984_v2 = vpop.f32.mrf.mxu0 }
 0x40b   :  { %2067 = vst [vmem:[#allocation17] sm:$0xff] %v2051_v18  ;;  %v2054_v51 = vadd.f32 %v4438_v45, %v1993_v41  ;;  %v1985_v58 = vadd.f32 %v1984_v2, %v4368_v61 }
 0x40c   :  { %v3172_v37 = vpop.f32.mrf.mxu0 }
 0x40d   :  { %2070 = vst [vmem:[#allocation17 + $0x18] sm:$0xff] %v2054_v51  ;;  %v2052_v27 = vadd.f32 %v4438_v45, %v1985_v58  ;;  %v2006_v59 = vadd.f32 %v3172_v37, %v4370_v28 }
 0x40e   :  { %v1997_v19 = vpop.f32.mrf.mxu0 }
 0x40f   :  { %2068 = vst [vmem:[#allocation17 + $0x8] sm:$0xff] %v2052_v27  ;;  %v2057_v39 = vadd.f32 %v4438_v45, %v2006_v59  ;;  %v1998_v34 = vadd.f32 %v1997_v19, %v4372_v24 }
 0x410   :  { %v3173_v38 = vpop.f32.mrf.mxu0 }
 0x411   :  { %2073 = vst [vmem:[#allocation17 + $0x30] sm:$0xff] %v2057_v39  ;;  %v2055_v42 = vadd.f32 %v4438_v45, %v1998_v34  ;;  %v2009_v61 = vadd.f32 %v3173_v38, %v4374_v0 }
 0x412   :  { %v2000_v44 = vpop.f32.mrf.mxu0 }
 0x413   :  { %2071 = vst [vmem:[#allocation17 + $0x20] sm:$0xff] %v2055_v42  ;;  %v2058_v28 = vadd.f32 %v4438_v45, %v2009_v61  ;;  %v2001_v22 = vadd.f32 %v2000_v44, %v4376_v14 }
 0x414   :  { %v3176_v57 = vpop.f32.mrf.mxu0 }
 0x415   :  { %2074 = vst [vmem:[#allocation17 + $0x38] sm:$0xff] %v2058_v28  ;;  %v2056_v30 = vadd.f32 %v4438_v45, %v2001_v22  ;;  %v2022_v24 = vadd.f32 %v3176_v57, %v4378_v6 }
 0x416   :  { %v2013_v36 = vpop.f32.mrf.mxu0 }
 0x417   :  { %2072 = vst [vmem:[#allocation17 + $0x28] sm:$0xff] %v2056_v30  ;;  %v2061_v0 = vadd.f32 %v4438_v45, %v2022_v24  ;;  %v2014_v16 = vadd.f32 %v2013_v36, %v4380_v23 }
 0x418   :  { %v3177_v46 = vpop.f32.mrf.mxu0 }
 0x419   :  { %2077 = vst [vmem:[#allocation17 + $0x50] sm:$0xff] %v2061_v0  ;;  %v2059_v35 = vadd.f32 %v4438_v45, %v2014_v16  ;;  %v2025_v14 = vadd.f32 %v3177_v46, %v4382_v49 }
 0x41a   :  { %v2016_v60 = vpop.f32.mrf.mxu0 }
 0x41b   :  { %2075 = vst [vmem:[#allocation17 + $0x40] sm:$0xff] %v2059_v35  ;;  %v2062_v6 = vadd.f32 %v4438_v45, %v2025_v14  ;;  %v2017_v7 = vadd.f32 %v2016_v60, %v4384_v21  ;;  %v2482_v21 = vpop.f32.mrf.mxu1 }
 0x41c   :  { %v3180_v15 = vpop.f32.mrf.mxu0 }
 0x41d   :  { %2078 = vst [vmem:[#allocation17 + $0x58] sm:$0xff] %v2062_v6  ;;  %v2060_v3 = vadd.f32 %v4438_v45, %v2017_v7  ;;  %v2038_v23 = vadd.f32 %v3180_v15, %v4386_v1  ;;  %v3272_v32 = vpop.f32.mrf.mxu1 }
 0x41e   :  { %v2029_v11 = vpop.f32.mrf.mxu0 }
 0x41f   :  { %2076 = vst [vmem:[#allocation17 + $0x48] sm:$0xff] %v2060_v3  ;;  %v2065_v33 = vadd.f32 %v4438_v45, %v2038_v23  ;;  %v2030_v49 = vadd.f32 %v2029_v11, %v4388_v12  ;;  %v4486_v12 = vld [vmem:[%s4540_s17] ss:$0 sm:$0xff] }
 0x420   :  { %v3181_v55 = vpop.f32.mrf.mxu0 }
 0x421   :  { %2081 = vst [vmem:[#allocation17 + $0x70] sm:$0xff] %v2065_v33  ;;  %v2063_v62 = vadd.f32 %v4438_v45, %v2030_v49  ;;  %v2041_v17 = vadd.f32 %v3181_v55, %v4390_v5 }
 0x422   :  { %v2032_v40 = vpop.f32.mrf.mxu0 }
 0x423   :  { %2079 = vst [vmem:[#allocation17 + $0x60] sm:$0xff] %v2063_v62  ;;  %v2066_v1 = vadd.f32 %v4438_v45, %v2041_v17  ;;  %v2033_v52 = vadd.f32 %v2032_v40, %v4392_v8 }
 0x424   :  { %v3232_v26 = vpop.f32.mrf.mxu0 }
 0x425   :  { %2082 = vst [vmem:[#allocation17 + $0x78] sm:$0xff] %v2066_v1  ;;  %v2064_v47 = vadd.f32 %v4438_v45, %v2033_v52  ;;  %v2472_v5 = vadd.f32 %v4441_v43, %v3232_v26 }
 0x426   :  { %v2318_v9 = vpop.f32.mrf.mxu0 }
 0x427   :  { %2080 = vst [vmem:[#allocation17 + $0x68] sm:$0xff] %v2064_v47  ;;  %v2535_v25 = vadd.f32 %v4486_v12, %v2472_v5  ;;  %v2464_v54 = vadd.f32 %v4447_v29, %v2318_v9 }
 0x428   :  { %v3233_v8 = vpop.f32.mrf.mxu0 }
 0x429   :  { %3577 = shalt.err (!%p3574_p2)
}
 0x42a   :  { %s3632_s17 = smov 128   ;;  %s3633_s29 = smov 8   ;;  %2551 = vst [vmem:[#allocation16 + $0x10] sm:$0xff] %v2535_v25  ;;  %v2533_v45 = vadd.f32 %v4486_v12, %v2464_v54  ;;  %v2475_v63 = vadd.f32 %v4453_v13, %v3233_v8  ;;  %v2495_v43 = vpop.f32.mrf.mxu1  ;;  %v2321_v10 = vpop.f32.mrf.mxu0 }
 0x42b   :  { %2588 = dma.vmem_to_hbm [thread:$0]  %s2583_s27, 2048, %s4542_s19, [#allocation18], %s3632_s17, %s3632_s17, %s3633_s29   ;;  %v2467_v50 = vadd.f32 %v4459_v53, %v2321_v10 }
 0x42c   :  { %2549 = vst [vmem:[#allocation16] sm:$0xff] %v2533_v45  ;;  %v2536_v20 = vadd.f32 %v4486_v12, %v2475_v63  ;;  %v3236_v4 = vpop.f32.mrf.mxu0  ;;  %v3273_v29 = vpop.f32.mrf.mxu1  ;;  %s3634_s19 = smov [#allocation16]  }
 0x42d   :  { %v2534_v18 = vadd.f32 %v4486_v12, %v2467_v50  ;;  %v2488_v41 = vadd.f32 %v4465_v48, %v3236_v4  ;;  %s2570_s11 = sshll.u32 %s3634_s19, 4  ;;  %s2571_s11 = int_to_ptr.vmem [resolvable:$true] %s2570_s11 }
 0x42e   :  { %2552 = vst [vmem:[#allocation16 + $0x18] sm:$0xff] %v2536_v20  ;;  %v2334_v2 = vpop.f32.mrf.mxu0  ;;  %v2498_v13 = vpop.f32.mrf.mxu1  ;;  %s3586_s30 = scalar_lea.vmem %s2571_s11, 2048  ;;  %p3591_p4 = scmp.lt.s32.totalorder %s2571_s11, %s2571_s11 }
 0x42f   :  { %2550 = vst [vmem:[#allocation16 + $0x8] sm:$0xff] %v2534_v18  ;;  %v2539_v51 = vadd.f32 %v4486_v12, %v2488_v41  ;;  %v2480_v58 = vadd.f32 %v4471_v56, %v2334_v2  ;;  %p3587_p3 = scmp.ne.s32.totalorder %s2571_s11, %s3586_s30  ;;  %p3592_p5 = scmp.lt.s32.totalorder %s3586_s30, %s3586_s30 }
 0x430   :  { %v3237_v37 = vpop.f32.mrf.mxu0  ;;  %v3276_v53 = vpop.f32.mrf.mxu1 }
 0x431   :  { %2555 = vst [vmem:[#allocation16 + $0x30] sm:$0xff] %v2539_v51  ;;  %v2537_v27 = vadd.f32 %v4486_v12, %v2480_v58  ;;  %v2491_v59 = vadd.f32 %v3269_v31, %v3237_v37  ;;  %p3593_p6 = por %p3592_p5, %p3591_p4 }
 0x432   :  { %v2337_v19 = vpop.f32.mrf.mxu0  ;;  %v2511_v48 = vpop.f32.mrf.mxu1 }
 0x433   :  { %2553 = vst [vmem:[#allocation16 + $0x20] sm:$0xff] %v2537_v27  ;;  %v2540_v39 = vadd.f32 %v4486_v12, %v2491_v59  ;;  %v2483_v34 = vadd.f32 %v2482_v21, %v2337_v19  ;;  %p3594_p7 = pnand %p3593_p6, %p3587_p3 }
 0x434   :  { %v3240_v38 = vpop.f32.mrf.mxu0  ;;  %v3277_v56 = vpop.f32.mrf.mxu1 }
 0x435   :  { %2556 = vst [vmem:[#allocation16 + $0x38] sm:$0xff] %v2540_v39  ;;  %v2538_v42 = vadd.f32 %v4486_v12, %v2483_v34  ;;  %v2504_v61 = vadd.f32 %v3272_v32, %v3240_v38 }
 0x436   :  { %v2350_v44 = vpop.f32.mrf.mxu0  ;;  %v2514_v31 = vpop.f32.mrf.mxu1 }
 0x437   :  { %2554 = vst [vmem:[#allocation16 + $0x28] sm:$0xff] %v2538_v42  ;;  %v2543_v28 = vadd.f32 %v4486_v12, %v2504_v61  ;;  %v2496_v22 = vadd.f32 %v2495_v43, %v2350_v44 }
 0x438   :  { %v3241_v57 = vpop.f32.mrf.mxu0 }
 0x439   :  { %2559 = vst [vmem:[#allocation16 + $0x50] sm:$0xff] %v2543_v28  ;;  %v2541_v30 = vadd.f32 %v4486_v12, %v2496_v22  ;;  %v2507_v24 = vadd.f32 %v3273_v29, %v3241_v57 }
 0x43a   :  { %v2353_v36 = vpop.f32.mrf.mxu0 }
 0x43b   :  { %2557 = vst [vmem:[#allocation16 + $0x40] sm:$0xff] %v2541_v30  ;;  %v2544_v0 = vadd.f32 %v4486_v12, %v2507_v24  ;;  %v2499_v16 = vadd.f32 %v2498_v13, %v2353_v36 }
 0x43c   :  { %v3244_v46 = vpop.f32.mrf.mxu0 }
 0x43d   :  { %2560 = vst [vmem:[#allocation16 + $0x58] sm:$0xff] %v2544_v0  ;;  %v2542_v35 = vadd.f32 %v4486_v12, %v2499_v16  ;;  %v2520_v14 = vadd.f32 %v3276_v53, %v3244_v46 }
 0x43e   :  { %v2366_v60 = vpop.f32.mrf.mxu0 }
 0x43f   :  { %2558 = vst [vmem:[#allocation16 + $0x48] sm:$0xff] %v2542_v35  ;;  %v2547_v6 = vadd.f32 %v4486_v12, %v2520_v14  ;;  %v2512_v7 = vadd.f32 %v2511_v48, %v2366_v60 }
 0x440   :  { %v3245_v15 = vpop.f32.mrf.mxu0 }
 0x441   :  { %2563 = vst [vmem:[#allocation16 + $0x70] sm:$0xff] %v2547_v6  ;;  %v2545_v3 = vadd.f32 %v4486_v12, %v2512_v7  ;;  %v2523_v23 = vadd.f32 %v3277_v56, %v3245_v15 }
 0x442   :  { %v2369_v11 = vpop.f32.mrf.mxu0 }
 0x443   :  { %2561 = vst [vmem:[#allocation16 + $0x60] sm:$0xff] %v2545_v3  ;;  %v2548_v33 = vadd.f32 %v4486_v12, %v2523_v23  ;;  %v2515_v49 = vadd.f32 %v2514_v31, %v2369_v11 }
 0x445   :  { %2564 = vst [vmem:[#allocation16 + $0x78] sm:$0xff] %v2548_v33  ;;  %v2546_v55 = vadd.f32 %v4486_v12, %v2515_v49 }
 0x447   :  { %2562 = vst [vmem:[#allocation16 + $0x68] sm:$0xff] %v2546_v55 }
 0x448   :  { %3597 = shalt.err (!%p3594_p7)
}
 0x449   :  { %2576 = dma.vmem_to_hbm [thread:$0]  %s2571_s11, 2048, %s4541_s18, [#allocation4], %s3632_s17, %s3632_s17, %s3633_s29  }
 0x44a   :  { %3616 = dma.done.wait [#allocation4], 2048  }
 0x44b   :  { %3617 = vsyncadd [#allocation4], 4294965248 }
 0x44c   :  { %3618 = dma.done.wait [#allocation18], 2048  }
 0x44d   :  { %3619 = vsyncadd [#allocation18], 4294965248 }
 0x44e   :  { %2595 = vsyncpa [#allocation3], 1 }
 0x44f   :  { %2596 = vsyncpa [#allocation6], 1 }
 0x450   :  { %2597 = vsyncpa [#allocation9], 1 }
 0x451   :  { %2598 = vsyncpa [#allocation12], 1 }
 0x452   :  { %2599 = vsyncpa [#allocation15], 1 }
 0x453   :  { %2600 = vsyncpa [#allocation4], 1 }
 0x454   :  { %2601 = vsyncpa [#allocation18], 1 }

</bundles_post_ra>
